<compile_context>
chip_gen: v5e
topology: v5e:2x2
jax: 0.10.0
libtpu: 0.0.40
codegen_flags: <defaults>
</compile_context>

<pallas_src>
import functools
import math

import jax
import jax.numpy as jnp
from jax.experimental import pallas as pl
from jax.experimental.pallas import tpu as pltpu


# -----------------------------------------------------------------------------
# In-kernel helpers (f32 math)
# -----------------------------------------------------------------------------
def _gelu_tanh(x):
    # tanh-approximate GELU: tanh runs on the EUP (separate VLIW slot), keeping
    # the VALU free.  |err| vs exact erf GELU ~1e-3 abs, inside bf16 noise.
    c = math.sqrt(2.0 / math.pi)
    return 0.5 * x * (1.0 + jnp.tanh(c * (x + 0.044715 * x * x * x)))


def _layer_norm(x, gamma, beta, eps=1e-12):
    # Matches PyTorch nn.LayerNorm(eps=1e-12): biased variance, eps in sqrt.
    mean = jnp.mean(x, axis=-1, keepdims=True)
    cent = x - mean
    var = jnp.mean(cent * cent, axis=-1, keepdims=True)
    inv = jax.lax.rsqrt(var + eps)
    return cent * inv * gamma + beta


# -----------------------------------------------------------------------------
# Fused transformer-block kernel (one batch element per grid step)
# -----------------------------------------------------------------------------
def _transformer_block_kernel(
    x_ref,                       # (1, S, H)  f32
    wqkv_ref, bqkv_ref,          # (H, 3H) bf16, (1, 3H) f32
    wo_ref, bo_ref,              # (H, H)  bf16, (1, H)  f32
    ln1_g_ref, ln1_b_ref,        # (1, H)  f32,  (1, H)  f32
    w1_ref, b1_ref,              # (H, 4H) bf16, (1, 4H) f32
    w2_ref, b2_ref,              # (4H, H) bf16, (1, H)  f32
    ln2_g_ref, ln2_b_ref,        # (1, H)  f32,  (1, H)  f32
    out_ref,                     # (1, S, H) f32
    *, num_heads, head_dim, ff_chunk,
):
    x = x_ref[0]                                          # (S, H) f32 residual
    hid = num_heads * head_dim
    x_bf = x.astype(jnp.bfloat16)

    # --- fused QKV projection: one lane-dense bf16 MXU matmul ---------------
    qkv = jnp.dot(x_bf, wqkv_ref[...], preferred_element_type=jnp.float32)
    qkv = qkv + bqkv_ref[...]                             # (S, 3H) f32

    scale = 1.0 / math.sqrt(head_dim)                     # hoisted: applied once
    q = (qkv[:, 0 * hid:1 * hid] * scale).astype(jnp.bfloat16)
    k = qkv[:, 1 * hid:2 * hid].astype(jnp.bfloat16)
    v = qkv[:, 2 * hid:3 * hid].astype(jnp.bfloat16)

    def to_heads(m):                                      # (S, H) -> (nh, S, hd)
        return jnp.stack(
            [m[:, h * head_dim:(h + 1) * head_dim] for h in range(num_heads)],
            axis=0)

    qh, kh, vh = to_heads(q), to_heads(k), to_heads(v)

    # --- batched multi-head attention (single MXU call per stage) -----------
    s = jnp.einsum('hqd,hkd->hqk', qh, kh,
                   preferred_element_type=jnp.float32)    # (nh, S, S) f32
    # TODO(synk): attention mask / incremental-decode `cache` paths not
    # implemented (forward here corresponds to mask=None, cache=None).
    s = s - jnp.max(s, axis=-1, keepdims=True)
    p = jnp.exp(s)
    p = p * pl.reciprocal(jnp.sum(p, axis=-1, keepdims=True), approx=True)
    # attn_dropout: identity in eval mode.
    ctx = jnp.einsum('hqk,hkd->hqd', p.astype(jnp.bfloat16), vh,
                     preferred_element_type=jnp.float32)  # (nh, S, hd) f32

    # heads -> (S, H); one lane-dense copy feeding a single big output matmul
    attn = jnp.concatenate([ctx[h] for h in range(num_heads)], axis=-1)
    attn = jnp.dot(attn.astype(jnp.bfloat16), wo_ref[...],
                   preferred_element_type=jnp.float32) + bo_ref[...]
    # dropout_layer: identity in eval mode.
    y = _layer_norm(attn + x, ln1_g_ref[...], ln1_b_ref[...])

    # --- FeedForward (task_id-selected branch), K-chunked over inner dim ----
    # TODO(synk): for very large S, a flash-style seq-tiled variant (separate
    # QKV projection pass) would replace the full (S, S) score materialization.
    y_bf = y.astype(jnp.bfloat16)
    inner = w1_ref.shape[1]
    ff = None
    for c0 in range(0, inner, ff_chunk):
        c1 = min(c0 + ff_chunk, inner)
        h1 = jnp.dot(y_bf, w1_ref[:, c0:c1],
                     preferred_element_type=jnp.float32) + b1_ref[:, c0:c1]
        h1 = _gelu_tanh(h1)
        part = jnp.dot(h1.astype(jnp.bfloat16), w2_ref[c0:c1, :],
                       preferred_element_type=jnp.float32)
        ff = part if ff is None else ff + part
    ff = ff + b2_ref[...]
    # ff_dropout / dropout_layer: identity in eval mode.
    out = _layer_norm(ff + y, ln2_g_ref[...], ln2_b_ref[...])

    out_ref[0] = out.astype(out_ref.dtype)


# -----------------------------------------------------------------------------
# Wrapper
# -----------------------------------------------------------------------------
def transformer_block(inp, params, task_id, num_heads, *, ff_chunk=1024):
    """inp: (B, S, H) float32.  task_id selects one of the 3 FF / FF-norm branches."""
    B, S, H = inp.shape
    head_dim = H // num_heads

    wqkv, bqkv = params["attn_qkv"]
    wo, bo = params["attn_out"]
    ln1_g, ln1_b = params["attn_norm"]
    w1, b1, w2, b2 = params["ff"][task_id]
    ln2_g, ln2_b = params["ff_norm"][task_id]

    # bf16 weight storage: MXU-native on v5e/v6e/v7x, halves weight VMEM / HBM
    # traffic.  Biases + LayerNorm affine params stay f32.
    bf = lambda w: w.astype(jnp.bfloat16)
    weights = (bf(wqkv), bqkv, bf(wo), bo, ln1_g, ln1_b,
               bf(w1), b1, bf(w2), b2, ln2_g, ln2_b)

    def weight_spec(arr):
        nd = arr.ndim
        # Constant index_map => block fetched once and stays resident;
        # Buffered(1) disables double-buffering, halving weight VMEM.
        return pl.BlockSpec(arr.shape, lambda b, _nd=nd: (0,) * _nd,
                            pipeline_mode=pl.Buffered(1))

    inner = int(w1.shape[1])
    ff_chunk = max(128, min(int(ff_chunk), inner))

    kernel = functools.partial(
        _transformer_block_kernel,
        num_heads=num_heads, head_dim=head_dim, ff_chunk=ff_chunk)

    # Advisory cost estimate so XLA schedules around the fused call sensibly.
    flops = (2 * B * S * H * 3 * H                 # QKV projection
             + 4 * B * num_heads * S * S * head_dim  # QK^T + PV
             + 2 * B * S * H * H                   # output projection
             + 4 * B * S * H * inner)              # FeedForward
    transcendentals = B * (num_heads * S * S + S * inner)  # exp + tanh
    bytes_accessed = (2 * inp.size * inp.dtype.itemsize
                      + sum(int(w.size) * w.dtype.itemsize for w in weights))

    # Raise the scoped-VMEM limit (default 16/32 MiB) so realistic H keeps the
    # bf16 weights resident; stay well under physical VMEM on every generation.
    try:
        vmem_limit = int(pltpu.get_tpu_info().vmem_capacity_bytes) * 3 // 4
    except Exception:
        vmem_limit = 48 * 1024 * 1024

    return pl.pallas_call(
        kernel,
        out_shape=jax.ShapeDtypeStruct((B, S, H), jnp.float32),
        grid=(B,),
        in_specs=[pl.BlockSpec((1, S, H), lambda b: (b, 0, 0))]
        + [weight_spec(w) for w in weights],
        out_specs=pl.BlockSpec((1, S, H), lambda b: (b, 0, 0)),
        compiler_params=pltpu.CompilerParams(
            dimension_semantics=("parallel",),
            vmem_limit_bytes=int(vmem_limit)),
        cost_estimate=pl.CostEstimate(
            flops=int(flops),
            transcendentals=int(transcendentals),
            bytes_accessed=int(bytes_accessed)),
    )(inp, *weights)


# -----------------------------------------------------------------------------
# Pure-JAX reference (f32) for a correctness cross-check
# -----------------------------------------------------------------------------
def _ref_forward(inp, params, task_id, num_heads):
    wqkv, bqkv = params["attn_qkv"]
    wo, bo = params["attn_out"]
    ln1_g, ln1_b = params["attn_norm"]
    w1, b1, w2, b2 = params["ff"][task_id]
    ln2_g, ln2_b = params["ff_norm"][task_id]
    B, S, H = inp.shape
    hd = H // num_heads

    def ln(x, g, b, eps=1e-12):
        m = x.mean(-1, keepdims=True)
        v = ((x - m) ** 2).mean(-1, keepdims=True)
        return (x - m) * jax.lax.rsqrt(v + eps) * g + b

    qkv = inp @ wqkv + bqkv
    q, k, v = jnp.split(qkv, 3, axis=-1)
    q = q.reshape(B, S, num_heads, hd).transpose(0, 2, 1, 3) / math.sqrt(hd)
    k = k.reshape(B, S, num_heads, hd).transpose(0, 2, 1, 3)
    v = v.reshape(B, S, num_heads, hd).transpose(0, 2, 1, 3)
    p = jax.nn.softmax(q @ k.transpose(0, 1, 3, 2), axis=-1)
    ctx = (p @ v).transpose(0, 2, 1, 3).reshape(B, S, H)
    attn = ctx @ wo + bo
    y = ln(attn + inp, ln1_g, ln1_b)
    ff = _gelu_tanh(y @ w1 + b1) @ w2 + b2
    return ln(ff + y, ln2_g, ln2_b)


# -----------------------------------------------------------------------------
# Deterministic parameter init (shapes match the PyTorch __init__)
# -----------------------------------------------------------------------------
def init_params(key, hidden_dim):
    inner_dim = 4 * hidden_dim

    def linear(k, din, dout):
        k1, k2 = jax.random.split(k)
        bound = 1.0 / math.sqrt(din)
        w = jax.random.uniform(k1, (din, dout), jnp.float32, -bound, bound)
        b = jax.random.uniform(k2, (1, dout), jnp.float32, -bound, bound)
        return w, b

    keys = jax.random.split(key, 8)
    params = {}
    params["attn_qkv"] = linear(keys[0], hidden_dim, 3 * hidden_dim)
    params["attn_out"] = linear(keys[1], hidden_dim, hidden_dim)
    params["attn_norm"] = (jnp.ones((1, hidden_dim), jnp.float32),
                           jnp.zeros((1, hidden_dim), jnp.float32))
    ff, ff_norm = [], []
    for i in range(3):
        w1, b1 = linear(keys[2 + i], hidden_dim, inner_dim)
        w2, b2 = linear(keys[5 + i], inner_dim, hidden_dim)
        ff.append((w1, b1, w2, b2))
        ff_norm.append((jnp.ones((1, hidden_dim), jnp.float32),
                        jnp.zeros((1, hidden_dim), jnp.float32)))
    params["ff"] = ff
    params["ff_norm"] = ff_norm
    return params


if __name__ == "__main__":
    # H = 128 keeps the output/activation lane dim a multiple of 128
    # (lane-dense, unmasked stores); ff_chunk=256 exercises the FF chunk loop.
    B, S, H, NUM_HEADS = 2, 8, 128, 4
    key = jax.random.PRNGKey(0)
    kx, kp = jax.random.split(key)
    x = jax.random.normal(kx, (B, S, H), dtype=jnp.float32)
    params = init_params(kp, H)

    out = transformer_block(x, params, task_id=1, num_heads=NUM_HEADS,
                            ff_chunk=256)
    out = jax.block_until_ready(out)

    assert out.shape == (B, S, H) and out.dtype == jnp.float32
    assert bool(jnp.all(jnp.isfinite(out)))

    # Loose tolerance: kernel runs bf16 matmuls (f32 accumulation), the
    # reference is end-to-end f32.
    ref = _ref_forward(x, params, task_id=1, num_heads=NUM_HEADS)
    max_err = float(jnp.max(jnp.abs(out - ref)))
    assert max_err < 0.15, f"max abs err vs f32 reference: {max_err}"

    print("KERNEL_OK")
</pallas_src>

<mosaic_0001>
module attributes {stable_mosaic.version = 11 : i64} {
  func.func @_transformer_block_kernel(%arg0: i32, %arg1: memref<1x8x128xf32, #tpu.memory_space<vmem>>, %arg2: memref<128x384xbf16, #tpu.memory_space<vmem>>, %arg3: memref<1x384xf32, #tpu.memory_space<vmem>>, %arg4: memref<128x128xbf16, #tpu.memory_space<vmem>>, %arg5: memref<1x128xf32, #tpu.memory_space<vmem>>, %arg6: memref<1x128xf32, #tpu.memory_space<vmem>>, %arg7: memref<1x128xf32, #tpu.memory_space<vmem>>, %arg8: memref<128x512xbf16, #tpu.memory_space<vmem>>, %arg9: memref<1x512xf32, #tpu.memory_space<vmem>>, %arg10: memref<512x128xbf16, #tpu.memory_space<vmem>>, %arg11: memref<1x128xf32, #tpu.memory_space<vmem>>, %arg12: memref<1x128xf32, #tpu.memory_space<vmem>>, %arg13: memref<1x128xf32, #tpu.memory_space<vmem>>, %arg14: memref<1x8x128xf32, #tpu.memory_space<vmem>>) attributes {dimension_semantics = [#tpu.dimension_semantics<parallel>], iteration_bounds = array<i64: 2>, scalar_prefetch = 0 : i64, scratch_operands = 0 : i64, tpu.core_type = #tpu.core_type<tc>, window_params = [{transform_indices = @transform_0, window_bounds = array<i64: 1, 8, 128>}, {pipeline_mode = #tpu.pipeline_mode<synchronous>, transform_indices = @transform_1, window_bounds = array<i64: 128, 384>}, {pipeline_mode = #tpu.pipeline_mode<synchronous>, transform_indices = @transform_2, window_bounds = array<i64: 1, 384>}, {pipeline_mode = #tpu.pipeline_mode<synchronous>, transform_indices = @transform_3, window_bounds = array<i64: 128, 128>}, {pipeline_mode = #tpu.pipeline_mode<synchronous>, transform_indices = @transform_4, window_bounds = array<i64: 1, 128>}, {pipeline_mode = #tpu.pipeline_mode<synchronous>, transform_indices = @transform_5, window_bounds = array<i64: 1, 128>}, {pipeline_mode = #tpu.pipeline_mode<synchronous>, transform_indices = @transform_6, window_bounds = array<i64: 1, 128>}, {pipeline_mode = #tpu.pipeline_mode<synchronous>, transform_indices = @transform_7, window_bounds = array<i64: 128, 512>}, {pipeline_mode = #tpu.pipeline_mode<synchronous>, transform_indices = @transform_8, window_bounds = array<i64: 1, 512>}, {pipeline_mode = #tpu.pipeline_mode<synchronous>, transform_indices = @transform_9, window_bounds = array<i64: 512, 128>}, {pipeline_mode = #tpu.pipeline_mode<synchronous>, transform_indices = @transform_10, window_bounds = array<i64: 1, 128>}, {pipeline_mode = #tpu.pipeline_mode<synchronous>, transform_indices = @transform_11, window_bounds = array<i64: 1, 128>}, {pipeline_mode = #tpu.pipeline_mode<synchronous>, transform_indices = @transform_12, window_bounds = array<i64: 1, 128>}, {transform_indices = @transform_13, window_bounds = array<i64: 1, 8, 128>}]} {
    %c0 = arith.constant 0 : index
    %c0_0 = arith.constant 0 : index
    %c0_1 = arith.constant 0 : index
    %0 = vector.load %arg1[%c0, %c0_0, %c0_1] : memref<1x8x128xf32, #tpu.memory_space<vmem>>, vector<1x8x128xf32>
    %1 = vector.shape_cast %0 : vector<1x8x128xf32> to vector<8x128xf32>
    %2 = arith.truncf %1 : vector<8x128xf32> to vector<8x128xbf16>
    %c0_2 = arith.constant 0 : index
    %c0_3 = arith.constant 0 : index
    %3 = vector.load %arg2[%c0_2, %c0_3] : memref<128x384xbf16, #tpu.memory_space<vmem>>, vector<128x384xbf16>
    %cst = arith.constant dense<0.000000e+00> : vector<8x384xf32>
    %4 = tpu.matmul %2, %3, %cst {dimension_numbers = #tpu.dot_dimension_numbers<[1], [0], [0], [1], [0, 0, 1, 1], [], []>} : vector<8x128xbf16>, vector<128x384xbf16>, vector<8x384xf32> -> vector<8x384xf32>
    %c0_4 = arith.constant 0 : index
    %c0_5 = arith.constant 0 : index
    %5 = vector.load %arg3[%c0_4, %c0_5] : memref<1x384xf32, #tpu.memory_space<vmem>>, vector<1x384xf32>
    %6 = vector.broadcast %5 : vector<1x384xf32> to vector<8x384xf32>
    %7 = arith.addf %4, %6 : vector<8x384xf32>
    %8 = vector.extract_strided_slice %7 {offsets = [0, 0], sizes = [8, 128], strides = [1, 1]} : vector<8x384xf32> to vector<8x128xf32>
    %cst_6 = arith.constant 0.176776692 : f32
    %9 = vector.broadcast %cst_6 : f32 to vector<8x128xf32>
    %10 = arith.mulf %8, %9 : vector<8x128xf32>
    %11 = arith.truncf %10 : vector<8x128xf32> to vector<8x128xbf16>
    %12 = vector.extract_strided_slice %7 {offsets = [0, 128], sizes = [8, 128], strides = [1, 1]} : vector<8x384xf32> to vector<8x128xf32>
    %13 = arith.truncf %12 : vector<8x128xf32> to vector<8x128xbf16>
    %14 = vector.extract_strided_slice %7 {offsets = [0, 256], sizes = [8, 128], strides = [1, 1]} : vector<8x384xf32> to vector<8x128xf32>
    %15 = arith.truncf %14 : vector<8x128xf32> to vector<8x128xbf16>
    %16 = vector.extract_strided_slice %11 {offsets = [0, 0], sizes = [8, 32], strides = [1, 1]} : vector<8x128xbf16> to vector<8x32xbf16>
    %17 = vector.extract_strided_slice %11 {offsets = [0, 32], sizes = [8, 32], strides = [1, 1]} : vector<8x128xbf16> to vector<8x32xbf16>
    %18 = vector.extract_strided_slice %11 {offsets = [0, 64], sizes = [8, 32], strides = [1, 1]} : vector<8x128xbf16> to vector<8x32xbf16>
    %19 = vector.extract_strided_slice %11 {offsets = [0, 96], sizes = [8, 32], strides = [1, 1]} : vector<8x128xbf16> to vector<8x32xbf16>
    %20 = vector.shape_cast %16 : vector<8x32xbf16> to vector<1x8x32xbf16>
    %21 = vector.shape_cast %17 : vector<8x32xbf16> to vector<1x8x32xbf16>
    %22 = vector.shape_cast %18 : vector<8x32xbf16> to vector<1x8x32xbf16>
    %23 = vector.shape_cast %19 : vector<8x32xbf16> to vector<1x8x32xbf16>
    %24 = tpu.concatenate %20, %21, %22, %23 in 0 : vector<1x8x32xbf16>, vector<1x8x32xbf16>, vector<1x8x32xbf16>, vector<1x8x32xbf16> -> vector<4x8x32xbf16>
    %25 = vector.extract_strided_slice %13 {offsets = [0, 0], sizes = [8, 32], strides = [1, 1]} : vector<8x128xbf16> to vector<8x32xbf16>
    %26 = vector.extract_strided_slice %13 {offsets = [0, 32], sizes = [8, 32], strides = [1, 1]} : vector<8x128xbf16> to vector<8x32xbf16>
    %27 = vector.extract_strided_slice %13 {offsets = [0, 64], sizes = [8, 32], strides = [1, 1]} : vector<8x128xbf16> to vector<8x32xbf16>
    %28 = vector.extract_strided_slice %13 {offsets = [0, 96], sizes = [8, 32], strides = [1, 1]} : vector<8x128xbf16> to vector<8x32xbf16>
    %29 = vector.shape_cast %25 : vector<8x32xbf16> to vector<1x8x32xbf16>
    %30 = vector.shape_cast %26 : vector<8x32xbf16> to vector<1x8x32xbf16>
    %31 = vector.shape_cast %27 : vector<8x32xbf16> to vector<1x8x32xbf16>
    %32 = vector.shape_cast %28 : vector<8x32xbf16> to vector<1x8x32xbf16>
    %33 = tpu.concatenate %29, %30, %31, %32 in 0 : vector<1x8x32xbf16>, vector<1x8x32xbf16>, vector<1x8x32xbf16>, vector<1x8x32xbf16> -> vector<4x8x32xbf16>
    %34 = vector.extract_strided_slice %15 {offsets = [0, 0], sizes = [8, 32], strides = [1, 1]} : vector<8x128xbf16> to vector<8x32xbf16>
    %35 = vector.extract_strided_slice %15 {offsets = [0, 32], sizes = [8, 32], strides = [1, 1]} : vector<8x128xbf16> to vector<8x32xbf16>
    %36 = vector.extract_strided_slice %15 {offsets = [0, 64], sizes = [8, 32], strides = [1, 1]} : vector<8x128xbf16> to vector<8x32xbf16>
    %37 = vector.extract_strided_slice %15 {offsets = [0, 96], sizes = [8, 32], strides = [1, 1]} : vector<8x128xbf16> to vector<8x32xbf16>
    %38 = vector.shape_cast %34 : vector<8x32xbf16> to vector<1x8x32xbf16>
    %39 = vector.shape_cast %35 : vector<8x32xbf16> to vector<1x8x32xbf16>
    %40 = vector.shape_cast %36 : vector<8x32xbf16> to vector<1x8x32xbf16>
    %41 = vector.shape_cast %37 : vector<8x32xbf16> to vector<1x8x32xbf16>
    %42 = tpu.concatenate %38, %39, %40, %41 in 0 : vector<1x8x32xbf16>, vector<1x8x32xbf16>, vector<1x8x32xbf16>, vector<1x8x32xbf16> -> vector<4x8x32xbf16>
    "tpu.trace_start"() <{level = 10 : i32, message = "hqd,hkd->hqk"}> : () -> ()
    %cst_7 = arith.constant dense<0.000000e+00> : vector<4x8x8xf32>
    %43 = tpu.matmul %24, %33, %cst_7 {dimension_numbers = #tpu.dot_dimension_numbers<[2], [2], [1], [1], [0, 0, 0, 1, 1, 1], [0], [0]>} : vector<4x8x32xbf16>, vector<4x8x32xbf16>, vector<4x8x8xf32> -> vector<4x8x8xf32>
    "tpu.trace_stop"() : () -> ()
    %cst_8 = arith.constant dense<0xFF800000> : vector<4x8xf32>
    %44 = vector.multi_reduction <maximumf>, %43, %cst_8 [2] : vector<4x8x8xf32> to vector<4x8xf32>
    %45 = vector.shape_cast %44 : vector<4x8xf32> to vector<4x8x1xf32>
    %46 = vector.broadcast %45 : vector<4x8x1xf32> to vector<4x8x8xf32>
    %47 = arith.subf %43, %46 : vector<4x8x8xf32>
    %48 = math.exp %47 : vector<4x8x8xf32>
    %cst_9 = arith.constant dense<0.000000e+00> : vector<4x8xf32>
    %49 = vector.multi_reduction <add>, %48, %cst_9 [2] : vector<4x8x8xf32> to vector<4x8xf32>
    %50 = vector.shape_cast %49 : vector<4x8xf32> to vector<4x8x1xf32>
    %51 = tpu.reciprocal %50 {approx = true} : vector<4x8x1xf32> -> vector<4x8x1xf32>
    %52 = vector.broadcast %51 : vector<4x8x1xf32> to vector<4x8x8xf32>
    %53 = arith.mulf %48, %52 : vector<4x8x8xf32>
    %54 = arith.truncf %53 : vector<4x8x8xf32> to vector<4x8x8xbf16>
    "tpu.trace_start"() <{level = 10 : i32, message = "hqk,hkd->hqd"}> : () -> ()
    %cst_10 = arith.constant dense<0.000000e+00> : vector<4x8x32xf32>
    %55 = tpu.matmul %54, %42, %cst_10 {dimension_numbers = #tpu.dot_dimension_numbers<[2], [1], [1], [2], [0, 0, 0, 1, 1, 2], [0], [0]>} : vector<4x8x8xbf16>, vector<4x8x32xbf16>, vector<4x8x32xf32> -> vector<4x8x32xf32>
    "tpu.trace_stop"() : () -> ()
    %56 = vector.extract_strided_slice %55 {offsets = [0, 0, 0], sizes = [1, 8, 32], strides = [1, 1, 1]} : vector<4x8x32xf32> to vector<1x8x32xf32>
    %57 = vector.shape_cast %56 : vector<1x8x32xf32> to vector<8x32xf32>
    %58 = vector.extract_strided_slice %55 {offsets = [1, 0, 0], sizes = [1, 8, 32], strides = [1, 1, 1]} : vector<4x8x32xf32> to vector<1x8x32xf32>
    %59 = vector.shape_cast %58 : vector<1x8x32xf32> to vector<8x32xf32>
    %60 = vector.extract_strided_slice %55 {offsets = [2, 0, 0], sizes = [1, 8, 32], strides = [1, 1, 1]} : vector<4x8x32xf32> to vector<1x8x32xf32>
    %61 = vector.shape_cast %60 : vector<1x8x32xf32> to vector<8x32xf32>
    %62 = vector.extract_strided_slice %55 {offsets = [3, 0, 0], sizes = [1, 8, 32], strides = [1, 1, 1]} : vector<4x8x32xf32> to vector<1x8x32xf32>
    %63 = vector.shape_cast %62 : vector<1x8x32xf32> to vector<8x32xf32>
    %64 = tpu.concatenate %57, %59, %61, %63 in 1 : vector<8x32xf32>, vector<8x32xf32>, vector<8x32xf32>, vector<8x32xf32> -> vector<8x128xf32>
    %65 = arith.truncf %64 : vector<8x128xf32> to vector<8x128xbf16>
    %c0_11 = arith.constant 0 : index
    %c0_12 = arith.constant 0 : index
    %66 = vector.load %arg4[%c0_11, %c0_12] : memref<128x128xbf16, #tpu.memory_space<vmem>>, vector<128x128xbf16>
    %cst_13 = arith.constant dense<0.000000e+00> : vector<8x128xf32>
    %67 = tpu.matmul %65, %66, %cst_13 {dimension_numbers = #tpu.dot_dimension_numbers<[1], [0], [0], [1], [0, 0, 1, 1], [], []>} : vector<8x128xbf16>, vector<128x128xbf16>, vector<8x128xf32> -> vector<8x128xf32>
    %c0_14 = arith.constant 0 : index
    %c0_15 = arith.constant 0 : index
    %68 = vector.load %arg5[%c0_14, %c0_15] : memref<1x128xf32, #tpu.memory_space<vmem>>, vector<1x128xf32>
    %69 = vector.broadcast %68 : vector<1x128xf32> to vector<8x128xf32>
    %70 = arith.addf %67, %69 : vector<8x128xf32>
    %71 = arith.addf %70, %1 : vector<8x128xf32>
    %c0_16 = arith.constant 0 : index
    %c0_17 = arith.constant 0 : index
    %72 = vector.load %arg6[%c0_16, %c0_17] : memref<1x128xf32, #tpu.memory_space<vmem>>, vector<1x128xf32>
    %c0_18 = arith.constant 0 : index
    %c0_19 = arith.constant 0 : index
    %73 = vector.load %arg7[%c0_18, %c0_19] : memref<1x128xf32, #tpu.memory_space<vmem>>, vector<1x128xf32>
    %cst_20 = arith.constant dense<0.000000e+00> : vector<8xf32>
    %74 = vector.multi_reduction <add>, %71, %cst_20 [1] : vector<8x128xf32> to vector<8xf32>
    %75 = vector.shape_cast %74 : vector<8xf32> to vector<8x1xf32>
    %cst_21 = arith.constant 1.280000e+02 : f32
    %76 = vector.broadcast %cst_21 : f32 to vector<8x1xf32>
    %77 = arith.divf %75, %76 : vector<8x1xf32>
    %78 = vector.broadcast %77 : vector<8x1xf32> to vector<8x128xf32>
    %79 = arith.subf %71, %78 : vector<8x128xf32>
    %80 = arith.mulf %79, %79 : vector<8x128xf32>
    %cst_22 = arith.constant dense<0.000000e+00> : vector<8xf32>
    %81 = vector.multi_reduction <add>, %80, %cst_22 [1] : vector<8x128xf32> to vector<8xf32>
    %82 = vector.shape_cast %81 : vector<8xf32> to vector<8x1xf32>
    %cst_23 = arith.constant 1.280000e+02 : f32
    %83 = vector.broadcast %cst_23 : f32 to vector<8x1xf32>
    %84 = arith.divf %82, %83 : vector<8x1xf32>
    %cst_24 = arith.constant 9.99999996E-13 : f32
    %85 = vector.broadcast %cst_24 : f32 to vector<8x1xf32>
    %86 = arith.addf %84, %85 : vector<8x1xf32>
    %87 = math.rsqrt %86 : vector<8x1xf32>
    %88 = vector.broadcast %87 : vector<8x1xf32> to vector<8x128xf32>
    %89 = arith.mulf %79, %88 : vector<8x128xf32>
    %90 = vector.broadcast %72 : vector<1x128xf32> to vector<8x128xf32>
    %91 = arith.mulf %89, %90 : vector<8x128xf32>
    %92 = vector.broadcast %73 : vector<1x128xf32> to vector<8x128xf32>
    %93 = arith.addf %91, %92 : vector<8x128xf32>
    %94 = arith.truncf %93 : vector<8x128xf32> to vector<8x128xbf16>
    %c0_25 = arith.constant 0 : index
    %c0_26 = arith.constant 0 : index
    %95 = vector.load %arg8[%c0_25, %c0_26] : memref<128x512xbf16, #tpu.memory_space<vmem>>, vector<128x256xbf16>
    %cst_27 = arith.constant dense<0.000000e+00> : vector<8x256xf32>
    %96 = tpu.matmul %94, %95, %cst_27 {dimension_numbers = #tpu.dot_dimension_numbers<[1], [0], [0], [1], [0, 0, 1, 1], [], []>} : vector<8x128xbf16>, vector<128x256xbf16>, vector<8x256xf32> -> vector<8x256xf32>
    %c0_28 = arith.constant 0 : index
    %c0_29 = arith.constant 0 : index
    %97 = vector.load %arg9[%c0_28, %c0_29] : memref<1x512xf32, #tpu.memory_space<vmem>>, vector<1x256xf32>
    %98 = vector.broadcast %97 : vector<1x256xf32> to vector<8x256xf32>
    %99 = arith.addf %96, %98 : vector<8x256xf32>
    %cst_30 = arith.constant 5.000000e-01 : f32
    %100 = vector.broadcast %cst_30 : f32 to vector<8x256xf32>
    %101 = arith.mulf %100, %99 : vector<8x256xf32>
    %cst_31 = arith.constant 4.471500e-02 : f32
    %102 = vector.broadcast %cst_31 : f32 to vector<8x256xf32>
    %103 = arith.mulf %102, %99 : vector<8x256xf32>
    %104 = arith.mulf %103, %99 : vector<8x256xf32>
    %105 = arith.mulf %104, %99 : vector<8x256xf32>
    %106 = arith.addf %99, %105 : vector<8x256xf32>
    %cst_32 = arith.constant 0.797884583 : f32
    %107 = vector.broadcast %cst_32 : f32 to vector<8x256xf32>
    %108 = arith.mulf %107, %106 : vector<8x256xf32>
    %109 = math.tanh %108 : vector<8x256xf32>
    %cst_33 = arith.constant 1.000000e+00 : f32
    %110 = vector.broadcast %cst_33 : f32 to vector<8x256xf32>
    %111 = arith.addf %110, %109 : vector<8x256xf32>
    %112 = arith.mulf %101, %111 : vector<8x256xf32>
    %113 = arith.truncf %112 : vector<8x256xf32> to vector<8x256xbf16>
    %c0_34 = arith.constant 0 : index
    %c0_35 = arith.constant 0 : index
    %114 = vector.load %arg10[%c0_34, %c0_35] : memref<512x128xbf16, #tpu.memory_space<vmem>>, vector<256x128xbf16>
    %cst_36 = arith.constant dense<0.000000e+00> : vector<8x128xf32>
    %115 = tpu.matmul %113, %114, %cst_36 {dimension_numbers = #tpu.dot_dimension_numbers<[1], [0], [0], [1], [0, 0, 1, 1], [], []>} : vector<8x256xbf16>, vector<256x128xbf16>, vector<8x128xf32> -> vector<8x128xf32>
    %c0_37 = arith.constant 0 : index
    %c256 = arith.constant 256 : index
    %116 = vector.load %arg8[%c0_37, %c256] : memref<128x512xbf16, #tpu.memory_space<vmem>>, vector<128x256xbf16>
    %cst_38 = arith.constant dense<0.000000e+00> : vector<8x256xf32>
    %117 = tpu.matmul %94, %116, %cst_38 {dimension_numbers = #tpu.dot_dimension_numbers<[1], [0], [0], [1], [0, 0, 1, 1], [], []>} : vector<8x128xbf16>, vector<128x256xbf16>, vector<8x256xf32> -> vector<8x256xf32>
    %c0_39 = arith.constant 0 : index
    %c256_40 = arith.constant 256 : index
    %118 = vector.load %arg9[%c0_39, %c256_40] : memref<1x512xf32, #tpu.memory_space<vmem>>, vector<1x256xf32>
    %119 = vector.broadcast %118 : vector<1x256xf32> to vector<8x256xf32>
    %120 = arith.addf %117, %119 : vector<8x256xf32>
    %cst_41 = arith.constant 5.000000e-01 : f32
    %121 = vector.broadcast %cst_41 : f32 to vector<8x256xf32>
    %122 = arith.mulf %121, %120 : vector<8x256xf32>
    %cst_42 = arith.constant 4.471500e-02 : f32
    %123 = vector.broadcast %cst_42 : f32 to vector<8x256xf32>
    %124 = arith.mulf %123, %120 : vector<8x256xf32>
    %125 = arith.mulf %124, %120 : vector<8x256xf32>
    %126 = arith.mulf %125, %120 : vector<8x256xf32>
    %127 = arith.addf %120, %126 : vector<8x256xf32>
    %cst_43 = arith.constant 0.797884583 : f32
    %128 = vector.broadcast %cst_43 : f32 to vector<8x256xf32>
    %129 = arith.mulf %128, %127 : vector<8x256xf32>
    %130 = math.tanh %129 : vector<8x256xf32>
    %cst_44 = arith.constant 1.000000e+00 : f32
    %131 = vector.broadcast %cst_44 : f32 to vector<8x256xf32>
    %132 = arith.addf %131, %130 : vector<8x256xf32>
    %133 = arith.mulf %122, %132 : vector<8x256xf32>
    %134 = arith.truncf %133 : vector<8x256xf32> to vector<8x256xbf16>
    %c256_45 = arith.constant 256 : index
    %c0_46 = arith.constant 0 : index
    %135 = vector.load %arg10[%c256_45, %c0_46] : memref<512x128xbf16, #tpu.memory_space<vmem>>, vector<256x128xbf16>
    %cst_47 = arith.constant dense<0.000000e+00> : vector<8x128xf32>
    %136 = tpu.matmul %134, %135, %cst_47 {dimension_numbers = #tpu.dot_dimension_numbers<[1], [0], [0], [1], [0, 0, 1, 1], [], []>} : vector<8x256xbf16>, vector<256x128xbf16>, vector<8x128xf32> -> vector<8x128xf32>
    %137 = arith.addf %115, %136 : vector<8x128xf32>
    %c0_48 = arith.constant 0 : index
    %c0_49 = arith.constant 0 : index
    %138 = vector.load %arg11[%c0_48, %c0_49] : memref<1x128xf32, #tpu.memory_space<vmem>>, vector<1x128xf32>
    %139 = vector.broadcast %138 : vector<1x128xf32> to vector<8x128xf32>
    %140 = arith.addf %137, %139 : vector<8x128xf32>
    %141 = arith.addf %140, %93 : vector<8x128xf32>
    %c0_50 = arith.constant 0 : index
    %c0_51 = arith.constant 0 : index
    %142 = vector.load %arg12[%c0_50, %c0_51] : memref<1x128xf32, #tpu.memory_space<vmem>>, vector<1x128xf32>
    %c0_52 = arith.constant 0 : index
    %c0_53 = arith.constant 0 : index
    %143 = vector.load %arg13[%c0_52, %c0_53] : memref<1x128xf32, #tpu.memory_space<vmem>>, vector<1x128xf32>
    %cst_54 = arith.constant dense<0.000000e+00> : vector<8xf32>
    %144 = vector.multi_reduction <add>, %141, %cst_54 [1] : vector<8x128xf32> to vector<8xf32>
    %145 = vector.shape_cast %144 : vector<8xf32> to vector<8x1xf32>
    %cst_55 = arith.constant 1.280000e+02 : f32
    %146 = vector.broadcast %cst_55 : f32 to vector<8x1xf32>
    %147 = arith.divf %145, %146 : vector<8x1xf32>
    %148 = vector.broadcast %147 : vector<8x1xf32> to vector<8x128xf32>
    %149 = arith.subf %141, %148 : vector<8x128xf32>
    %150 = arith.mulf %149, %149 : vector<8x128xf32>
    %cst_56 = arith.constant dense<0.000000e+00> : vector<8xf32>
    %151 = vector.multi_reduction <add>, %150, %cst_56 [1] : vector<8x128xf32> to vector<8xf32>
    %152 = vector.shape_cast %151 : vector<8xf32> to vector<8x1xf32>
    %cst_57 = arith.constant 1.280000e+02 : f32
    %153 = vector.broadcast %cst_57 : f32 to vector<8x1xf32>
    %154 = arith.divf %152, %153 : vector<8x1xf32>
    %cst_58 = arith.constant 9.99999996E-13 : f32
    %155 = vector.broadcast %cst_58 : f32 to vector<8x1xf32>
    %156 = arith.addf %154, %155 : vector<8x1xf32>
    %157 = math.rsqrt %156 : vector<8x1xf32>
    %158 = vector.broadcast %157 : vector<8x1xf32> to vector<8x128xf32>
    %159 = arith.mulf %149, %158 : vector<8x128xf32>
    %160 = vector.broadcast %142 : vector<1x128xf32> to vector<8x128xf32>
    %161 = arith.mulf %159, %160 : vector<8x128xf32>
    %162 = vector.broadcast %143 : vector<1x128xf32> to vector<8x128xf32>
    %163 = arith.addf %161, %162 : vector<8x128xf32>
    %c0_59 = arith.constant 0 : index
    %c0_60 = arith.constant 0 : index
    %c0_61 = arith.constant 0 : index
    %164 = vector.load %arg14[%c0_59, %c0_60, %c0_61] : memref<1x8x128xf32, #tpu.memory_space<vmem>>, vector<1x8x128xf32>
    %165 = vector.shape_cast %164 : vector<1x8x128xf32> to vector<8x128xf32>
    %166 = vector.shape_cast %163 : vector<8x128xf32> to vector<1x8x128xf32>
    tpu.vector_store %arg14[%c0_59, %c0_60, %c0_61], %166 {strides = array<i32>} : memref<1x8x128xf32, #tpu.memory_space<vmem>>, vector<1x8x128xf32>,
    return
  }
  func.func @transform_0(%arg0: i32) -> (i32, i32, i32) {
    %c0_i32 = arith.constant 0 : i32
    %c0_i32_0 = arith.constant 0 : i32
    %c0_i32_1 = arith.constant 0 : i32
    return %arg0, %c0_i32, %c0_i32_0 : i32, i32, i32
  }
  func.func @transform_1(%arg0: i32) -> (i32, i32) {
    %c0_i32 = arith.constant 0 : i32
    %c0_i32_0 = arith.constant 0 : i32
    %c0_i32_1 = arith.constant 0 : i32
    return %c0_i32, %c0_i32_0 : i32, i32
  }
  func.func @transform_2(%arg0: i32) -> (i32, i32) {
    %c0_i32 = arith.constant 0 : i32
    %c0_i32_0 = arith.constant 0 : i32
    %c0_i32_1 = arith.constant 0 : i32
    return %c0_i32, %c0_i32_0 : i32, i32
  }
  func.func @transform_3(%arg0: i32) -> (i32, i32) {
    %c0_i32 = arith.constant 0 : i32
    %c0_i32_0 = arith.constant 0 : i32
    %c0_i32_1 = arith.constant 0 : i32
    return %c0_i32, %c0_i32_0 : i32, i32
  }
  func.func @transform_4(%arg0: i32) -> (i32, i32) {
    %c0_i32 = arith.constant 0 : i32
    %c0_i32_0 = arith.constant 0 : i32
    %c0_i32_1 = arith.constant 0 : i32
    return %c0_i32, %c0_i32_0 : i32, i32
  }
  func.func @transform_5(%arg0: i32) -> (i32, i32) {
    %c0_i32 = arith.constant 0 : i32
    %c0_i32_0 = arith.constant 0 : i32
    %c0_i32_1 = arith.constant 0 : i32
    return %c0_i32, %c0_i32_0 : i32, i32
  }
  func.func @transform_6(%arg0: i32) -> (i32, i32) {
    %c0_i32 = arith.constant 0 : i32
    %c0_i32_0 = arith.constant 0 : i32
    %c0_i32_1 = arith.constant 0 : i32
    return %c0_i32, %c0_i32_0 : i32, i32
  }
  func.func @transform_7(%arg0: i32) -> (i32, i32) {
    %c0_i32 = arith.constant 0 : i32
    %c0_i32_0 = arith.constant 0 : i32
    %c0_i32_1 = arith.constant 0 : i32
    return %c0_i32, %c0_i32_0 : i32, i32
  }
  func.func @transform_8(%arg0: i32) -> (i32, i32) {
    %c0_i32 = arith.constant 0 : i32
    %c0_i32_0 = arith.constant 0 : i32
    %c0_i32_1 = arith.constant 0 : i32
    return %c0_i32, %c0_i32_0 : i32, i32
  }
  func.func @transform_9(%arg0: i32) -> (i32, i32) {
    %c0_i32 = arith.constant 0 : i32
    %c0_i32_0 = arith.constant 0 : i32
    %c0_i32_1 = arith.constant 0 : i32
    return %c0_i32, %c0_i32_0 : i32, i32
  }
  func.func @transform_10(%arg0: i32) -> (i32, i32) {
    %c0_i32 = arith.constant 0 : i32
    %c0_i32_0 = arith.constant 0 : i32
    %c0_i32_1 = arith.constant 0 : i32
    return %c0_i32, %c0_i32_0 : i32, i32
  }
  func.func @transform_11(%arg0: i32) -> (i32, i32) {
    %c0_i32 = arith.constant 0 : i32
    %c0_i32_0 = arith.constant 0 : i32
    %c0_i32_1 = arith.constant 0 : i32
    return %c0_i32, %c0_i32_0 : i32, i32
  }
  func.func @transform_12(%arg0: i32) -> (i32, i32) {
    %c0_i32 = arith.constant 0 : i32
    %c0_i32_0 = arith.constant 0 : i32
    %c0_i32_1 = arith.constant 0 : i32
    return %c0_i32, %c0_i32_0 : i32, i32
  }
  func.func @transform_13(%arg0: i32) -> (i32, i32, i32) {
    %c0_i32 = arith.constant 0 : i32
    %c0_i32_0 = arith.constant 0 : i32
    %c0_i32_1 = arith.constant 0 : i32
    return %arg0, %c0_i32, %c0_i32_0 : i32, i32, i32
  }
}

</mosaic_0001>

<bundles_post_ra>
// kernel: tpu_custom_call.1
= control target key start
LH: loop header
LB: loop body
LE: loop exit
PB: predicated region body
PF: predicated region fallthrough
CT: control target
= control target key end

     0   :  { %s3157_s0 = inlined_call_operand.hbm [shape: f32[2,8,128], index: 0, kind: input, shape index: {}]   ;;  %s3158_s1 = inlined_call_operand.hbm [shape: bf16[128,384], index: 1, kind: input, shape index: {}]   ;;  %s3159_s2 = inlined_call_operand.hbm [shape: f32[1,384], index: 2, kind: input, shape index: {}]   ;;  %s3160_s3 = inlined_call_operand.hbm [shape: bf16[128,128], index: 3, kind: input, shape index: {}]   ;;  %s3161_s4 = inlined_call_operand.vmem [shape: f32[1,128], index: 4, kind: input, shape index: {}]   ;;  %s3162_s5 = inlined_call_operand.vmem [shape: f32[1,128], index: 5, kind: input, shape index: {}]   ;;  %s3163_s6 = inlined_call_operand.vmem [shape: f32[1,128], index: 6, kind: input, shape index: {}]   ;;  %s3164_s7 = inlined_call_operand.hbm [shape: bf16[128,512], index: 7, kind: input, shape index: {}]   ;;  %s3165_s8 = inlined_call_operand.vmem [shape: f32[1,512], index: 8, kind: input, shape index: {}]   ;;  %s3166_s9 = inlined_call_operand.hbm [shape: bf16[512,128], index: 9, kind: input, shape index: {}]   ;;  %s3167_s10 = inlined_call_operand.vmem [shape: f32[1,128], index: 10, kind: input, shape index: {}]   ;;  %s3168_s11 = inlined_call_operand.vmem [shape: f32[1,128], index: 11, kind: input, shape index: {}]   ;;  %s3169_s12 = inlined_call_operand.vmem [shape: f32[1,128], index: 12, kind: input, shape index: {}]   ;;  %s3170_s13 = inlined_call_operand.hbm [shape: f32[2,8,128], index: 13, kind: output, shape index: {}]  }
   0x1   :  { %3172 = sst [smem:[#allocation19_spill]] %s3158_s1 }
   0x2   :  { %3173 = sst [smem:[#allocation20_spill]] %s3159_s2 }
   0x3   :  { %3174 = sst [smem:[#allocation21_spill]] %s3160_s3 }
   0x4   :  { %3175 = sst [smem:[#allocation22_spill]] %s3164_s7 }
   0x5   :  { %3176 = sst [smem:[#allocation23_spill]] %s3168_s11 }
   0x6   :  { %3177 = sst [smem:[#allocation24_spill]] %s3169_s12 }
   0x7   :  { %3178 = sst [smem:[#allocation25_spill]] %s3170_s13 }
   0x8   :  { %18 = vsyncpa [#allocation3], 0 }
   0x9   :  { %20 = vsyncpa [#allocation3 + $0x1], 0 }
   0xa   :  { %21 = vsyncpa [#allocation6], 0 }
   0xb   :  { %22 = vsyncpa [#allocation9], 0 }
   0xc   :  { %23 = vsyncpa [#allocation12], 0 }
   0xd   :  { %24 = vsyncpa [#allocation4], 0 }
   0xe   :  { %26 = vsyncpa [#allocation4 + $0x1], 0  ;;  %s2888_s25 = smov 0   ;;  %s2890_s26 = smov 0  }
   0xf   :  { %s2892_s27 = smov 0   ;;  %s2894_s28 = smov 0  }
  0x10 LB: > { %s3179_s1 = sld [smem:[#allocation19_spill]]  ;;  %s2912_s15 = sadd.s32 4294967295, %s2801_s28   ;;  %s2801_s28 = sphi %s2894_s28, %s3196_s28   ;;  %s2797_s27 = sphi %s2892_s27, %s3195_s27   ;;  %s2793_s26 = sphi %s2890_s26, %s3194_s26   ;;  %s2789_s25 = sphi %s2888_s25, %s3193_s25  }
  0x11   : > { %p1891_p0 = scmp.ge.s32.totalorder %s2801_s28, 1  ;;  %p53_p1 = scmp.eq.s32.totalorder %s2912_s15, 0 }
  0x12   : > { %p341_p2 = scmp.lt.s32.totalorder %s2801_s28, 3  ;;  %s2803_s17 = smov [#allocation5]  }
  0x13   : > { %s354_s18 = sshll.u32 %s2803_s17, 4  ;;  %s3181_s3 = sld [smem:[#allocation21_spill]]  ;;  %s355_s18 = int_to_ptr.vmem [resolvable:$true] %s354_s18 }
  0x14   : > { %p2917_p3 = pnand %p1891_p0, %p341_p2  ;;  %s2804_s23 = smov [#allocation8]  }
  0x15   : > { %s380_s24 = sshll.u32 %s2804_s23, 4  ;;  %s2805_s29 = smov 192   ;;  %s381_s24 = int_to_ptr.vmem [resolvable:$true] %s380_s24 }
  0x16   : > { %s352_s14 = sshll.u32 %s3179_s1, 4  ;;  %p2424_p4 = pneg %p2917_p3  ;;  %s353_s14 = int_to_ptr.hbm [resolvable:$true] %s352_s14 }
  0x17   : > { %s2806_s30 = smov 12   ;;  %s2807_s17 = smov 64  }
  0x18   : > { %p2929_p6 = pnand %p2424_p4, %p53_p1  ;;  %s2808_s19 = smov 4  }
  0x19   : > { %s378_s21 = sshll.u32 %s3181_s3, 4  ;;  %s3183_s2 = sld [smem:[#allocation20_spill]]  ;;  %s379_s21 = int_to_ptr.hbm [resolvable:$true] %s378_s21 }
  0x1a   : > { %2427 = dma.hbm_to_vmem [thread:$0]  (!%p2929_p6), %s353_s14, 3072, %s355_s18, [#allocation6], %s2805_s29, %s2805_s29, %s2806_s30  }
  0x1b   : > { %2433 = dma.hbm_to_vmem [thread:$0]  (!%p2929_p6), %s379_s21, 1024, %s381_s24, [#allocation9], %s2807_s17, %s2807_s17, %s2808_s19  }
  0x1c   : > { %s2809_s12 = smov [#allocation7]   ;;  %s3184_s7 = sld [smem:[#allocation22_spill]] }
  0x1d   : > { %s369_s13 = sshll.u32 %s2809_s12, 4  ;;  %s2810_s18 = smov [#allocation10]   ;;  %s370_s13 = int_to_ptr.vmem [resolvable:$true] %s369_s13 }
  0x1e   : > { %s403_s1 = sshll.u32 %s2810_s18, 4  ;;  %s2811_s12 = smov 256   ;;  %s404_s1 = int_to_ptr.vmem [resolvable:$true] %s403_s1 }
  0x1f   : > { %s367_s3 = sshll.u32 %s3183_s2, 4  ;;  %s2812_s21 = smov 16   ;;  %s368_s3 = int_to_ptr.hbm [resolvable:$true] %s367_s3 }
  0x20   : > { %2430 = dma.hbm_to_vmem [thread:$0]  (!%p2929_p6), %s368_s3, 48, %s370_s13, [#allocation6]  }
  0x21   : > { %s418_s3 = sshll.u32 %s3166_s9, 4  ;;  %s2813_s13 = smov [#allocation11]   ;;  %s419_s3 = int_to_ptr.hbm [resolvable:$true] %s418_s3 }
  0x22   : > { %s401_s14 = sshll.u32 %s3184_s7, 4  ;;  %s420_s29 = sshll.u32 %s2813_s13, 4  ;;  %s402_s14 = int_to_ptr.hbm [resolvable:$true] %s401_s14  ;;  %s421_s29 = int_to_ptr.vmem [resolvable:$true] %s420_s29 }
  0x23   : > { %2436 = dma.hbm_to_vmem [thread:$0]  (!%p2929_p6), %s402_s14, 4096, %s404_s1, [#allocation9], %s2811_s12, %s2811_s12, %s2812_s21  }
  0x24   : > { %2439 = dma.hbm_to_vmem [thread:$0]  (!%p2929_p6), %s419_s3, 4096, %s421_s29, [#allocation12], %s2807_s17, %s2807_s17, %s2808_s19  }
  0x25   : > { %s1890_s30 = sadd.s32 4294967294, %s2801_s28   ;;  %s2954_s20 = sadd.s32 1, %s2801_s28  }
  0x26   : > { %s39_s23 = sadd.s32 1, %s2797_s27  ;;  %s36_s14 = ssub.s32 %s2801_s28, %s2954_s20 }
  0x27   : > { %p46_p7 = scmp.ne.s32.totalorder %s2797_s27, %s2793_s26  ;;  %p37_p8 = scmp.eq.s32.totalorder %s36_s14, 0 }
  0x28   : > { %p47_p9 = scmp.eq.s32.totalorder %s2801_s28, 0  ;;  %p52_p10 = scmp.ne.s32.totalorder %s2793_s26, %s2789_s25 }
  0x29   : > { %p328_p11 = scmp.eq.s32.totalorder %s2912_s15, 1  ;;  %p334_p0 = scmp.eq.s32.totalorder %s1890_s30, 1 }
  0x2a   : > { %s2966_s18 = scalar_select %p37_p8, %s2797_s27, %s39_s23  }
  0x2b   : > { %p2970_p12 = por %p53_p1, %p52_p10  ;;  %p2974_p13 = por %p328_p11, %p46_p7 }
  0x2c   : > { %p48_p2 = por %p47_p9, %p46_p7  ;;  %s443_s19 = sand.u32 1, %s2797_s27  }
  0x2d   : > { %p2979_p4 = por %p334_p0, %p52_p10  ;;  %p2453_p6 = scmp.lt.s32.totalorder %s2801_s28, 2 }
  0x2e   : > { %s1898_s12 = sshll.u32 %s443_s19, 3  ;;  %s1899_s21 = sshll.u32 %s2801_s28, 3 }
  0x2f   : > { %s451_s3 = scalar_lea.hbm %s3157_s0, %s1899_s21  ;;  %s447_s29 = scalar_lea.vmem [#allocation2], %s1898_s12 }
  0x30   : > { %s453_s13 = sshll.u32 %s451_s3, 4  ;;  %s455_s23 = sshll.u32 %s447_s29, 4  ;;  %s454_s13 = int_to_ptr.hbm [resolvable:$true] %s453_s13  ;;  %s456_s23 = int_to_ptr.vmem [resolvable:$true] %s455_s23 }
  0x31   : > { %p2988_p8 = pnand %p2453_p6, %p48_p2  ;;  %s444_s14 = scalar_lea.sflag [#allocation3], %s443_s19 }
  0x32   : > { %s2693_s2 = sshra.s32 %s454_s13, 4  ;;  %s2700_s12 = scalar_lea.hbm %s3157_s0, 16  ;;  %s2694_s2 = int_to_ptr.hbm [resolvable:$true] %s2693_s2 }
  0x33   : > { %s2695_s7 = scalar_lea.hbm %s2694_s2, 8  ;;  %p2697_p9 = pneg %p2988_p8 }
  0x34   : > { %p2696_p7 = scmp.ne.s32.totalorder %s2694_s2, %s2695_s7  ;;  %p2701_p0 = scmp.lt.s32.totalorder %s2694_s2, %s3157_s0 }
  0x35   : > { %p2702_p2 = scmp.lt.s32.totalorder %s2700_s12, %s2695_s7 }
  0x36   : > { %p2698_p10 = pnand %p2697_p9, %p2696_p7 }
  0x37   : > { %p2703_p6 = por %p2702_p2, %p2701_p0 }
  0x38   : > { %p2699_p11 = pneg %p2698_p10 }
  0x3a   : > { %p2704_p5 = pnand %p2703_p6, %p2699_p11 }
  0x3c   : > { %2707 = shalt.err (!%p2704_p5)
}
  0x3d   : > { %2443 = dma.hbm_to_vmem [thread:$0]  (!%p2988_p8), %s454_s13, 128, %s456_s23, %s444_s14  }
  0x3e   : > { %464 = sbr.rel (%p2917_p3) target bundleno = 2003 (0x7d3), region = 72  ;;  %s3005_s19 = sand.u32 (!%p2917_p3), 1, %s2793_s26  }
  0x3f   : > { %s1901_s29 = sshll.u32 (!%p2917_p3), %s3005_s19, 3  ;;  %s467_s21 = scalar_lea.sflag (!%p2917_p3), [#allocation3], %s3005_s19 }
  0x40   : > { %s3011_s2 = scalar_lea.vmem (!%p2917_p3), [#allocation2], %s1901_s29 }
  0x43   : > { %2768 = dma.done.wait (%p2970_p12), %s467_s21, 128  }
  0x44   : > { %2770 = vsyncadd (%p2970_p12), %s467_s21, 4294967168 }
  0x45   : > { %2772 = dma.done.wait (%p53_p1), [#allocation6], 3120  }
  0x46   : > { %2774 = vsyncadd (%p53_p1), [#allocation6], 4294964176 }
  0x47   : > { %2776 = dma.done.wait (%p53_p1), [#allocation9], 5120  }
  0x48   : > { %2778 = vsyncadd (%p53_p1), [#allocation9], 4294962176 }
  0x49   : > { %2780 = dma.done.wait (%p53_p1), [#allocation12], 4096  }
  0x4a   : > { %2782 = vsyncadd (%p53_p1), [#allocation12], 4294963200  ;;  %v2325_v0 = vld [vmem:[#allocation5 + $0xac] sm:$0xf]  ;;  %v1996_v1 = vld [vmem:[#allocation5 + $0xb4] sm:$0xf0] }
  0x4b   : > { %v2322_v2 = vld [vmem:[#allocation5 + $0x94] sm:$0xf]  ;;  %v1999_v3 = vor.u32 %v2325_v0, %v1996_v1  ;;  %v1984_v4 = vld [vmem:[#allocation5 + $0x9c] sm:$0xf0]  ;;  %v1994_v5 = vld [vmem:[#allocation5 + $0xa8] sm:$0xf] }
  0x4c   : > { %v2326_v6 = vld [vmem:[#allocation5 + $0xb0] sm:$0xf0]  ;;  %v1982_v8 = vld [vmem:[#allocation5 + $0x90] sm:$0xf]  ;;  %v1987_v9 = vor.u32 %v2322_v2, %v1984_v4  ;;  %v2323_v10 = vld [vmem:[#allocation5 + $0x98] sm:$0xf0] }
  0x4d   : > { %v1995_v7 = vor.u32 %v2326_v6, %v1994_v5  ;;  %723 = vmatpush.bf16.msra.mxu1 %v1999_v3  ;;  %v2319_v11 = vld [vmem:[#allocation5 + $0x7c] sm:$0xf]  ;;  %v1972_v12 = vld [vmem:[#allocation5 + $0x84] sm:$0xf0]  ;;  %v1983_v13 = vor.u32 %v2323_v10, %v1982_v8  ;;  %v1970_v14 = vld [vmem:[#allocation5 + $0x78] sm:$0xf] }
  0x4e   : > { %v2320_v15 = vld [vmem:[#allocation5 + $0x80] sm:$0xf0]  ;;  %v1975_v16 = vor.u32 %v2319_v11, %v1972_v12  ;;  %v1960_v18 = vld [vmem:[#allocation5 + $0x6c] sm:$0xf0]  ;;  %v1958_v20 = vld [vmem:[#allocation5 + $0x60] sm:$0xf] }
  0x4f   : > { %710 = vmatpush.bf16.msra.mxu0 %v1995_v7  ;;  %v2316_v17 = vld [vmem:[#allocation5 + $0x64] sm:$0xf]  ;;  %v1971_v19 = vor.u32 %v2320_v15, %v1970_v14  ;;  %v2317_v21 = vld [vmem:[#allocation5 + $0x68] sm:$0xf0]  ;;  %v1948_v24 = vld [vmem:[#allocation5 + $0x54] sm:$0xf0] }
  0x50   : > { %v2313_v22 = vld [vmem:[#allocation5 + $0x4c] sm:$0xf]  ;;  %v1963_v23 = vor.u32 %v2316_v17, %v1960_v18  ;;  %v1959_v25 = vor.u32 %v2317_v21, %v1958_v20  ;;  %v1946_v26 = vld [vmem:[#allocation5 + $0x48] sm:$0xf]  ;;  %v2314_v27 = vld [vmem:[#allocation5 + $0x50] sm:$0xf0] }
  0x51   : > { %724 = vmatpush.bf16.msra.mxu1 %v1987_v9  ;;  %v1951_v28 = vor.u32 %v2313_v22, %v1948_v24  ;;  %v2310_v29 = vld [vmem:[#allocation5 + $0x34] sm:$0xf]  ;;  %v1936_v30 = vld [vmem:[#allocation5 + $0x3c] sm:$0xf0]  ;;  %v1947_v31 = vor.u32 %v2314_v27, %v1946_v26  ;;  %v1934_v32 = vld [vmem:[#allocation5 + $0x30] sm:$0xf] }
  0x52   : > { %v2311_v33 = vld [vmem:[#allocation5 + $0x38] sm:$0xf0]  ;;  %v1939_v34 = vor.u32 %v2310_v29, %v1936_v30  ;;  %v1924_v36 = vld [vmem:[#allocation5 + $0x24] sm:$0xf0]  ;;  %v1922_v38 = vld [vmem:[#allocation5 + $0x18] sm:$0xf] }
  0x53   : > { %711 = vmatpush.bf16.msra.mxu0 %v1983_v13  ;;  %v2307_v35 = vld [vmem:[#allocation5 + $0x1c] sm:$0xf]  ;;  %v1935_v37 = vor.u32 %v2311_v33, %v1934_v32  ;;  %v2308_v39 = vld [vmem:[#allocation5 + $0x20] sm:$0xf0]  ;;  %v1912_v42 = vld [vmem:[#allocation5 + $0xc] sm:$0xf0] }
  0x54   : > { %v1927_v40 = vor.u32 %v2307_v35, %v1924_v36  ;;  %v2304_v41 = vld [vmem:[#allocation5 + $0x4] sm:$0xf]  ;;  %v1923_v43 = vor.u32 %v2308_v39, %v1922_v38  ;;  %v1910_v44 = vld [vmem:[#allocation5] sm:$0xf]  ;;  %v2305_v45 = vld [vmem:[#allocation5 + $0x8] sm:$0xf0] }
  0x55   : > { %725 = vmatpush.bf16.msra.mxu1 %v1975_v16  ;;  %v1915_v46 = vor.u32 %v2304_v41, %v1912_v42  ;;  %v3030_v47 = vld [vmem:[%s3011_s2] sm:$0xff]  ;;  %v1911_v48 = vor.u32 %v2305_v45, %v1910_v44  ;;  %v3038_v50 = vld [vmem:[#allocation7] sm:$0x7]  ;;  %vm774_vm0 = vcmask 261120   ;;  %s2814_s7 = smov 32   ;;  %s2815_s16 = smov 64  }
  0x56   : > { %v3034_v49 = vpack.c.bf16 %v3030_v47, %v3030_v47  ;;  %v577_v51 = vperm.slane %v3038_v50, 1  ;;  %v576_v52 = vperm.slane %v3038_v50, 0  ;;  %s2816_s22 = smov 96   ;;  %v2002_v5 = vld [vmem:[#allocation5 + $0xb0] sm:$0xf]  ;;  %vm851_vm1 = vcmask 64512  }
  0x57   : > { %712 = vmatpush.bf16.msra.mxu0 %v1971_v19  ;;  %v2327_v6 = vld [vmem:[#allocation5 + $0xb8] sm:$0xf0]  ;;  %v1990_v14 = vld [vmem:[#allocation5 + $0x98] sm:$0xf]  ;;  %v2324_v15 = vld [vmem:[#allocation5 + $0xa0] sm:$0xf0] }
  0x58   : > { %v2003_v8 = vor.u32 %v2327_v6, %v2002_v5  ;;  %v1978_v16 = vld [vmem:[#allocation5 + $0x80] sm:$0xf]  ;;  %v1991_v17 = vor.u32 %v2324_v15, %v1990_v14  ;;  %v2321_v18 = vld [vmem:[#allocation5 + $0x88] sm:$0xf0]  ;;  %v1966_v20 = vld [vmem:[#allocation5 + $0x68] sm:$0xf] }
  0x59   : > { %726 = vmatpush.bf16.msra.mxu1 %v1963_v23  ;;  %v1979_v19 = vor.u32 %v2321_v18, %v1978_v16  ;;  %v2318_v21 = vld [vmem:[#allocation5 + $0x70] sm:$0xf0]  ;;  %v1954_v22 = vld [vmem:[#allocation5 + $0x50] sm:$0xf]  ;;  %v2315_v24 = vld [vmem:[#allocation5 + $0x58] sm:$0xf0] }
  0x5a   : > { %736 = vmatpush.bf16.msra.mxu2 %v2003_v8  ;;  %v1967_v23 = vor.u32 %v2318_v21, %v1966_v20  ;;  %v1942_v26 = vld [vmem:[#allocation5 + $0x38] sm:$0xf]  ;;  %v2312_v27 = vld [vmem:[#allocation5 + $0x40] sm:$0xf0]  ;;  %v1930_v29 = vld [vmem:[#allocation5 + $0x20] sm:$0xf] }
  0x5b   : > { %713 = vmatpush.bf16.msra.mxu0 %v1959_v25  ;;  %v1955_v25 = vor.u32 %v2315_v24, %v1954_v22  ;;  %v2309_v30 = vld [vmem:[#allocation5 + $0x28] sm:$0xf0]  ;;  %v1918_v32 = vld [vmem:[#allocation5 + $0x8] sm:$0xf]  ;;  %v2306_v33 = vld [vmem:[#allocation5 + $0x10] sm:$0xf0] }
  0x5c   : > { %vm903_vm2 = vcmask 1043456   ;;  %vm990_vm3 = vcmask 523264   ;;  %vm992_vm4 = vcmask 785408   ;;  %s3189_s30 = sld [smem:[#allocation23_spill]]  ;;  %s1757_s13 = scalar_lea.sflag [#allocation4], %s3005_s19 }
  0x5d   : > { %727 = vmatpush.bf16.msra.mxu1 %v1951_v28  ;;  %v1943_v28 = vor.u32 %v2312_v27, %v1942_v26  ;;  %s3190_s12 = sld [smem:[#allocation25_spill]] }
  0x5e   : > { %737 = vmatpush.bf16.msra.mxu2 %v1991_v17  ;;  %s3191_s2 = sld [smem:[#allocation24_spill]] }
  0x5f   : > { %714 = vmatpush.bf16.msra.mxu0 %v1947_v31  ;;  %v1931_v31 = vor.u32 %v2309_v30, %v1930_v29 }
  0x61   : > { %728 = vmatpush.bf16.msra.mxu1 %v1939_v34  ;;  %v1919_v34 = vor.u32 %v2306_v33, %v1918_v32  ;;  %v2335_v32 = vld [vmem:[#allocation8 + $0x38] sm:$0xff]  ;;  %v2334_v33 = vld [vmem:[#allocation8 + $0x30] sm:$0xff] }
  0x62   : > { %738 = vmatpush.bf16.msra.mxu2 %v1979_v19 }
  0x63   : > { %715 = vmatpush.bf16.msra.mxu0 %v1935_v37  ;;  %s2743_s11 = scalar_lea.hbm %s3190_s12, 16 }
  0x65   : > { %729 = vmatpush.bf16.msra.mxu1 %v1927_v40 }
  0x66   : > { %739 = vmatpush.bf16.msra.mxu2 %v1967_v23 }
  0x67   : > { %716 = vmatpush.bf16.msra.mxu0 %v1923_v43 }
  0x69   : > { %730 = vmatpush.bf16.msra.mxu1 %v1915_v46 }
  0x6a   : > { %740 = vmatpush.bf16.msra.mxu2 %v1955_v25 }
  0x6b   : > { %717 = vmatpush.bf16.msra.mxu0 %v1911_v48 }
  0x6c   : > { %731 = vmatmul.bf16.vlgmr.msra.gmra.mxu1 %v3034_v49 }
  0x6d   : > { %1063 = vmatpush.bf16.msrb.mxu1 %v2335_v32  ;;  %v2088_v32 = vld [vmem:[#allocation10 + $0xb0] sm:$0xf0] }
  0x6e   : > { %718 = vmatmul.bf16.vlgmr.msra.gmra.mxu0 %v3034_v49  ;;  %741 = vmatpush.bf16.msra.mxu2 %v1943_v28 }
  0x71   : > { %1064 = vmatpush.bf16.msrb.mxu1 %v2334_v33  ;;  %v2150_v33 = vld [vmem:[#allocation10 + $0xa8] sm:$0xf] }
  0x72   : > { %742 = vmatpush.bf16.msra.mxu2 %v1931_v31 }
  0x76   : > { %743 = vmatpush.bf16.msra.mxu2 %v1919_v34 }
  0x79   : > { %744 = vmatmul.bf16.vlgmr.msra.gmra.mxu2 %v3034_v49 }
  0xe9   : > { %v732_v53 = vpop.f32.mrf.mxu1 }
  0xea   : > { %v733_v54 = vadd.f32 %v732_v53, %v577_v51  ;;  %v578_v51 = vperm.slane %v3038_v50, 2 }
  0xeb   : > { %v719_v55 = vpop.f32.mrf.mxu0 }
  0xec   : > { %v720_v56 = vadd.f32 %v719_v55, %v576_v52  ;;  %v751_v57 = vpack.c.bf16 %v733_v54, %v733_v54 }
  0xee   : > { %765 = vrot.lane.b32.xlu2 %v751_v57, %s2814_s7  ;;  %763 = vrot.lane.b32.xlu1 %v751_v57, %s2815_s16  ;;  %v749_v58 = vmul.f32 0.17677669, %v720_v56  ;;  %v779_v59 = vsel %vm774_vm0, %v751_v57, 0 }
  0xef   : > { %761 = vrot.lane.b32.xlu0 %v751_v57, %s2816_s22  ;;  %788 = vmatpush.bf16.xpose.msra.mxu3 %v779_v59 }
  0xf0   : > { %v750_v61 = vpack.c.bf16 %v749_v58, %v749_v58 }
  0xf1   : > { %v734_v60 = vpop.f32.mrf.mxu1 }
  0xf3   : > { %v721_v62 = vpop.f32.mrf.mxu0 }
  0xf6   : > { %2004 = vmatmul.msk.bf16.vlgmr.msra.gmra.mxu3 %vm774_vm0, %v750_v61  ;;  %758 = vrot.lane.b32.xlu2 %v750_v61, %s2814_s7 }
  0xf7   : > { %754 = vrot.lane.b32.xlu0 %v750_v61, %s2816_s22  ;;  %756 = vrot.lane.b32.xlu1 %v750_v61, %s2815_s16 }
  0xfc   : > { %v745_v52 = vpop.f32.mrf.mxu2 }
  0xfd   : > { %v746_v53 = vadd.f32 %v745_v52, %v578_v51 }
  0xff   : > { %v752_v54 = vpack.c.bf16 %v746_v53, %v746_v53 }
 0x101   : > { %v905_v55 = vsel %vm903_vm2, %v752_v54, 0 }
 0x102   : > { %914 = vmatpush.bf16.msrb.mxu2 %v905_v55 }
 0x104   : > { %v747_v56 = vpop.f32.mrf.mxu2 }
 0x148   : > { %v766_v63 = vpop.permute.xlu2 %765 }
 0x149   : > { %v836_v0 = vsel %vm774_vm0, %v766_v63, 0 }
 0x14a   : > { %845 = vmatpush.bf16.xpose.msrb.mxu0 %v836_v0 }
 0x150   : > { %v759_v1 = vpop.permute.xlu2 %758 }
 0x151   : > { %2007 = vmatmul.msk.bf16.vlgmr.msrb.gmra.mxu0 %vm774_vm0, %v759_v1 }
 0x160   : > { %v764_v2 = vpop.permute.xlu1 %763 }
 0x161   : > { %v817_v3 = vsel %vm774_vm0, %v764_v2, 0  ;;  %v762_v4 = vpop.permute.xlu0 %761 }
 0x162   : > { %v798_v7 = vsel %vm774_vm0, %v762_v4, 0 }
 0x163   : > { %807 = vmatpush.bf16.xpose.msrb.mxu3 %v798_v7 }
 0x169   : > { %v755_v9 = vpop.permute.xlu0 %754  ;;  %v757_v10 = vpop.permute.xlu1 %756 }
 0x16a   : > { %2005 = vmatmul.msk.bf16.vlgmr.msrb.gmra.mxu3 %vm774_vm0, %v755_v9 }
 0x16b   : > { %826 = vmatpush.bf16.xpose.msra.mxu3 %v817_v3 }
 0x179   : > { %v790_v11 = vpop.f32.mrf.mxu3 }
 0x17a   : > { %2006 = vmatmul.msk.bf16.vlgmr.msra.gmra.mxu3 %vm774_vm0, %v757_v10  ;;  %v852_v12 = vsel %vm851_vm1, %v790_v11, -inf }
 0x17b   : > { %853 = vmax.xlane.f32.xlu0 %v852_v12 }
 0x181   : > { %v792_v13 = vpop.f32.mrf.mxu3 }
 0x1ce   : > { %v847_v35 = vpop.f32.mrf.mxu0 }
 0x1cf   : > { %v861_v49 = vsel %vm851_vm1, %v847_v35, -inf }
 0x1d6   : > { %v849_v36 = vpop.f32.mrf.mxu0 }
 0x1ed   : > { %v809_v37 = vpop.f32.mrf.mxu3 }
 0x1ee   : > { %v854_v38 = vpop.xlane.xlu0 %853  ;;  %v855_v39 = vsel %vm851_vm1, %v809_v37, -inf }
 0x1ef   : > { %v864_v40 = vsub.f32 %v790_v11, %v854_v38  ;;  %856 = vmax.xlane.f32.xlu1 %v855_v39  ;;  %v2333_v39 = vld [vmem:[#allocation8 + $0x28] sm:$0xff] }
 0x1f0   : > { %1065 = vmatpush.bf16.msrb.mxu1 %v2333_v39 }
 0x1f1   : > { %v868_v41 = vmul.f32 1.442695, %v864_v40  ;;  %v2332_v40 = vld [vmem:[#allocation8 + $0x20] sm:$0xff] }
 0x1f3   : > { %2513 = vpow2.f32 %v868_v41  ;;  %v2331_v41 = vld [vmem:[#allocation8 + $0x18] sm:$0xff] }
 0x1f4   : > { %1066 = vmatpush.bf16.msrb.mxu1 %v2332_v40  ;;  %v2078_v40 = vld [vmem:[#allocation10 + $0x80] sm:$0xf] }
 0x1f5   : > { %v811_v42 = vpop.f32.mrf.mxu3 }
 0x1f6   : > { %v2330_v42 = vld [vmem:[#allocation8 + $0x10] sm:$0xff] }
 0x1f8   : > { %1067 = vmatpush.bf16.msrb.mxu1 %v2331_v41  ;;  %v2345_v41 = vld [vmem:[#allocation10 + $0x8c] sm:$0xf0] }
 0x1f9   : > { %v2514_v43 = vpop.eup %2513 }
 0x1fa   : > { %v876_v44 = vsel %vm851_vm1, %v2514_v43, 0.0 }
 0x1fb   : > { %877 = vadd.xlane.f32.xlu0 %v876_v44  ;;  %v2328_v44 = vld [vmem:[#allocation8] sm:$0xff] }
 0x1fc   : > { %1068 = vmatpush.bf16.msrb.mxu1 %v2330_v42  ;;  %v2344_v42 = vld [vmem:[#allocation10 + $0x84] sm:$0xf] }
 0x1fd   : > { %v828_v45 = vpop.f32.mrf.mxu3 }
 0x1fe   : > { %v858_v46 = vsel %vm851_vm1, %v828_v45, -inf }
 0x1ff   : > { %859 = vmax.xlane.f32.xlu2 %v858_v46 }
 0x205   : > { %v830_v48 = vpop.f32.mrf.mxu3 }
 0x207   : > { %862 = vmax.xlane.f32.xlu2 %v861_v49 }
 0x20f   : > { %768 = vrot.lane.b32.xlu0 %v752_v54, %s2816_s22 }
 0x262   : > { %v857_v50 = vpop.xlane.xlu1 %856 }
 0x263   : > { %v865_v3 = vsub.f32 %v809_v37, %v857_v50  ;;  %v2104_v50 = vld [vmem:[#allocation10 + $0xf0] sm:$0xf0] }
 0x265   : > { %v870_v6 = vmul.f32 1.442695, %v865_v3 }
 0x26e   : > { %v878_v57 = vpop.xlane.xlu0 %877 }
 0x26f   : > { %2515 = vrcp.f32 %v878_v57 }
 0x272   : > { %v860_v58 = vpop.xlane.xlu2 %859 }
 0x273   : > { %v866_v59 = vsub.f32 %v828_v45, %v860_v58 }
 0x275   : > { %v2516_v60 = vpop.eup %2515  ;;  %v872_v61 = vmul.f32 1.442695, %v866_v59  ;;  %v2817_v59 = vmov 128.0  }
 0x276   : > { %v892_v62 = vmul.f32 %v2516_v60, %v2514_v43  ;;  %v2329_v43 = vld [vmem:[#allocation8 + $0x8] sm:$0xff]  ;;  %v2102_v60 = vld [vmem:[#allocation10 + $0xe0] sm:$0xf] }
 0x277   : > { %2517 = vpow2.f32 %v872_v61  ;;  %1069 = vmatpush.bf16.msrb.mxu1 %v2329_v43  ;;  %v2351_v61 = vld [vmem:[#allocation10 + $0xec] sm:$0xf0]  ;;  %v2079_v43 = vor.u32 %v2345_v41, %v2078_v40  ;;  %v2399_v40 = vld [vmem:[#allocation11 + $0xf8] sm:$0xff] }
 0x278   : > { %v896_v63 = vpack.c.bf16 %v892_v62, %v892_v62  ;;  %v2350_v62 = vld [vmem:[#allocation10 + $0xe4] sm:$0xf] }
 0x27a   : > { %v863_v0 = vpop.xlane.xlu2 %862  ;;  %2008 = vmatmul.msk.bf16.vlgmr.msrb.gmra.mxu2 %vm851_vm1, %v896_v63  ;;  %v2103_v63 = vor.u32 %v2351_v61, %v2102_v60  ;;  %v2375_v60 = vld [vmem:[#allocation10 + $0x74] sm:$0xf0] }
 0x27b   : > { %v867_v1 = vsub.f32 %v847_v35, %v863_v0  ;;  %1070 = vmatpush.bf16.msrb.mxu1 %v2328_v44  ;;  %v2166_v0 = vld [vmem:[#allocation10 + $0xe8] sm:$0xf]  ;;  %v2080_v44 = vld [vmem:[#allocation10 + $0x90] sm:$0xf0] }
 0x27d   : > { %v2518_v2 = vpop.eup %2517  ;;  %v874_v4 = vmul.f32 1.442695, %v867_v1  ;;  %v2383_v1 = vld [vmem:[#allocation10 + $0xf4] sm:$0xf0] }
 0x27e   : > { %v882_v5 = vsel %vm851_vm1, %v2518_v2, 0.0  ;;  %v2167_v3 = vor.u32 %v2383_v1, %v2166_v0  ;;  %v2062_v1 = vld [vmem:[#allocation10 + $0x40] sm:$0xf] }
 0x27f   : > { %2519 = vpow2.f32 %v874_v4  ;;  %883 = vadd.xlane.f32.xlu2 %v882_v5  ;;  %v2382_v4 = vld [vmem:[#allocation10 + $0xec] sm:$0xf]  ;;  %v2168_v5 = vld [vmem:[#allocation10 + $0xf8] sm:$0xf0] }
 0x280   : > { %2521 = vpow2.f32 %v870_v6  ;;  %v2171_v6 = vor.u32 %v2382_v4, %v2168_v5  ;;  %v2064_v5 = vld [vmem:[#allocation10 + $0x50] sm:$0xf0] }
 0x281   : > { %v769_v11 = vpop.permute.xlu0 %768 }
 0x282   : > { %v924_v12 = vsel %vm903_vm2, %v769_v11, 0  ;;  %1410 = vmatpush.bf16.msra.mxu1 %v2171_v6  ;;  %v2126_v6 = vld [vmem:[#allocation10 + $0x48] sm:$0xf] }
 0x283   : > { %933 = vmatpush.bf16.msra.mxu2 %v924_v12 }
 0x285   : > { %v2520_v7 = vpop.eup %2519 }
 0x286   : > { %v885_v8 = vsel %vm851_vm1, %v2520_v7, 0.0  ;;  %v2522_v9 = vpop.eup %2521 }
 0x287   : > { %886 = vadd.xlane.f32.xlu1 %v885_v8  ;;  %v879_v10 = vsel %vm851_vm1, %v2522_v9, 0.0  ;;  %1217 = vmatpush.bf16.msrb.mxu2 %v2103_v63  ;;  %v2374_v63 = vld [vmem:[#allocation10 + $0x6c] sm:$0xf] }
 0x28f   : > { %880 = vadd.xlane.f32.xlu1 %v879_v10 }
 0x297   : > { %770 = vrot.lane.b32.xlu2 %v752_v54, %s2815_s16 }
 0x2a8   : > { %772 = vrot.lane.b32.xlu1 %v752_v54, %s2814_s7  ;;  %v2507_v54 = vld [vmem:[%s3161_s4] ss:$0 sm:$0xff] }
 0x2f2   : > { %v884_v13 = vpop.xlane.xlu2 %883 }
 0x2f3   : > { %2523 = vrcp.f32 %v884_v13 }
 0x2f9   : > { %v2524_v14 = vpop.eup %2523 }
 0x2fa   : > { %v894_v15 = vmul.f32 %v2524_v14, %v2518_v2  ;;  %v887_v16 = vpop.xlane.xlu1 %886  ;;  %v771_v17 = vpop.permute.xlu2 %770  ;;  %v2107_v2 = vor.u32 %v2350_v62, %v2104_v50  ;;  %v2136_v50 = vld [vmem:[#allocation10 + $0x78] sm:$0xf0] }
 0x2fb   : > { %v943_v18 = vsel %vm903_vm2, %v771_v17, 0  ;;  %v2349_v17 = vld [vmem:[#allocation10 + $0xcc] sm:$0xf0]  ;;  %v2139_v0 = vor.u32 %v2374_v63, %v2136_v50 }
 0x2fc   : > { %v898_v19 = vpack.c.bf16 %v894_v15, %v894_v15  ;;  %952 = vmatpush.bf16.msrb.mxu3 %v943_v18  ;;  %v2348_v18 = vld [vmem:[#allocation10 + $0xc4] sm:$0xf]  ;;  %v2358_v63 = vld [vmem:[#allocation11 + $0x30] sm:$0xff] }
 0x2fd   : > { %v916_v20 = vpop.f32.mrf.mxu2  ;;  %v2366_v50 = vld [vmem:[#allocation11 + $0x70] sm:$0xff] }
 0x2ff   : > { %2010 = vmatmul.msk.bf16.vlgmr.msrb.gmra.mxu3 %vm851_vm1, %v898_v19 }
 0x300   : > { %1230 = vmatpush.bf16.msra.mxu3 %v2107_v2  ;;  %v2341_v2 = vld [vmem:[#allocation10 + $0x4c] sm:$0xf0] }
 0x301   : > { %v2063_v4 = vor.u32 %v2341_v2, %v2062_v1  ;;  %v2396_v1 = vld [vmem:[#allocation11 + $0xe0] sm:$0xff]  ;;  %v2357_v2 = vld [vmem:[#allocation11 + $0x28] sm:$0xff] }
 0x302   : > { %v881_v21 = vpop.xlane.xlu1 %880 }
 0x303   : > { %2525 = vrcp.f32 %v881_v21  ;;  %v2158_v21 = vld [vmem:[#allocation10 + $0xc8] sm:$0xf] }
 0x304   : > { %2527 = vrcp.f32 %v887_v16  ;;  %v2094_v16 = vld [vmem:[#allocation10 + $0xc0] sm:$0xf] }
 0x305   : > { %v918_v22 = vpop.f32.mrf.mxu2  ;;  %2529 = vrcp.f32 %v2817_v59  ;;  %v2095_v19 = vor.u32 %v2349_v17, %v2094_v16  ;;  %v2134_v59 = vld [vmem:[#allocation10 + $0x68] sm:$0xf]  ;;  %v2338_v16 = vld [vmem:[#allocation10 + $0x24] sm:$0xf] }
 0x306   : > { %v2381_v22 = vld [vmem:[#allocation10 + $0xd4] sm:$0xf0]  ;;  %v2135_v62 = vor.u32 %v2375_v60, %v2134_v59 }
 0x307   : > { %1218 = vmatpush.bf16.msrb.mxu2 %v2095_v19  ;;  %v2118_v19 = vld [vmem:[#allocation10 + $0x28] sm:$0xf]  ;;  %v2359_v60 = vld [vmem:[#allocation11 + $0x38] sm:$0xff] }
 0x309   : > { %v2526_v23 = vpop.eup %2525 }
 0x30a   : > { %v893_v24 = vmul.f32 %v2526_v23, %v2522_v9  ;;  %v2528_v26 = vpop.eup %2527 }
 0x30b   : > { %v895_v27 = vmul.f32 %v2528_v26, %v2520_v7  ;;  %v2530_v7 = vpop.eup %2529  ;;  %v2160_v26 = vld [vmem:[#allocation10 + $0xd8] sm:$0xf0] }
 0x30c   : > { %v897_v25 = vpack.c.bf16 %v893_v24, %v893_v24  ;;  %vm1086_vm5 = vweird.f32 %v2530_v7  ;;  %v2159_v24 = vor.u32 %v2381_v22, %v2158_v21 }
 0x30d   : > { %v899_v30 = vpack.c.bf16 %v895_v27, %v895_v27 }
 0x30e   : > { %2009 = vmatmul.msk.bf16.vlgmr.msra.gmra.mxu2 %vm851_vm1, %v897_v25  ;;  %v2380_v25 = vld [vmem:[#allocation10 + $0xcc] sm:$0xf] }
 0x30f   : > { %v2163_v27 = vor.u32 %v2380_v25, %v2160_v26  ;;  %v2046_v25 = vld [vmem:[#allocation10] sm:$0xf] }
 0x311   : > { %1411 = vmatpush.bf16.msra.mxu1 %v2163_v27  ;;  %v2337_v27 = vld [vmem:[#allocation10 + $0xc] sm:$0xf0] }
 0x31a   : > { %v773_v28 = vpop.permute.xlu1 %772 }
 0x31b   : > { %v962_v29 = vsel %vm903_vm2, %v773_v28, 0  ;;  %v2086_v28 = vld [vmem:[#allocation10 + $0xa0] sm:$0xf] }
 0x31c   : > { %971 = vmatpush.bf16.msra.mxu0 %v962_v29  ;;  %v2347_v29 = vld [vmem:[#allocation10 + $0xac] sm:$0xf0] }
 0x31f   : > { %2011 = vmatmul.msk.bf16.vlgmr.msra.gmra.mxu0 %vm851_vm1, %v899_v30  ;;  %v2346_v30 = vld [vmem:[#allocation10 + $0xa4] sm:$0xf] }
 0x320   : > { %1397 = vmatpush.bf16.msrb.mxu0 %v2167_v3  ;;  %v2340_v3 = vld [vmem:[#allocation10 + $0x44] sm:$0xf] }
 0x324   : > { %1398 = vmatpush.bf16.msrb.mxu0 %v2159_v24  ;;  %v2120_v24 = vld [vmem:[#allocation10 + $0x38] sm:$0xf0] }
 0x382   : > { %v954_v31 = vpop.f32.mrf.mxu3 }
 0x38a   : > { %v956_v34 = vpop.f32.mrf.mxu3 }
 0x38b   : > { %v2379_v34 = vld [vmem:[#allocation10 + $0xb4] sm:$0xf0] }
 0x391   : > { %v935_v35 = vpop.f32.mrf.mxu2 }
 0x392   : > { %978 = vrot.lane.b32.xlu0 %v935_v35, %s2814_s7  ;;  %v2091_v35 = vor.u32 %v2346_v30, %v2088_v32  ;;  %v2047_v30 = vor.u32 %v2337_v27, %v2046_v25  ;;  %v2110_v32 = vld [vmem:[#allocation10 + $0x8] sm:$0xf] }
 0x399   : > { %v937_v36 = vpop.f32.mrf.mxu2 }
 0x39a   : > { %982 = vrot.lane.b32.xlu0 %v954_v31, %s2815_s16  ;;  %v2087_v31 = vor.u32 %v2347_v29, %v2086_v28  ;;  %v2151_v36 = vor.u32 %v2379_v34, %v2150_v33  ;;  %v2336_v28 = vld [vmem:[#allocation10 + $0x4] sm:$0xf]  ;;  %v2048_v29 = vld [vmem:[#allocation10 + $0x10] sm:$0xf0]  ;;  %v2369_v33 = vld [vmem:[#allocation10 + $0x14] sm:$0xf0] }
 0x39b   : > { %v2368_v34 = vld [vmem:[#allocation10 + $0xc] sm:$0xf] }
 0x39c   : > { %v973_v37 = vpop.f32.mrf.mxu0  ;;  %1219 = vmatpush.bf16.msrb.mxu2 %v2087_v31  ;;  %1399 = vmatpush.bf16.msrb.mxu0 %v2151_v36  ;;  %v2051_v31 = vor.u32 %v2336_v28, %v2048_v29  ;;  %v2112_v36 = vld [vmem:[#allocation10 + $0x18] sm:$0xf0] }
 0x39d   : > { %986 = vrot.lane.b32.xlu2 %v973_v37, %s2816_s22  ;;  %v2378_v37 = vld [vmem:[#allocation10 + $0xac] sm:$0xf]  ;;  %s2301_s22 = sshll.u32 %s2912_s15, 3  ;;  %s538_s15 = scalar_lea.vmem [#allocation13], %s1901_s29 }
 0x39e   : > { %s1767_s24 = scalar_lea.hbm %s3190_s12, %s2301_s22  ;;  %s1769_s7 = sshll.u32 %s538_s15, 4  ;;  %s1770_s7 = int_to_ptr.vmem [resolvable:$true] %s1769_s7 }
 0x39f   : > { %s1771_s16 = sshll.u32 %s1767_s24, 4  ;;  %s1772_s16 = int_to_ptr.hbm [resolvable:$true] %s1771_s16 }
 0x3a0   : > { %1220 = vmatpush.bf16.msrb.mxu2 %v2079_v43  ;;  %v2398_v43 = vld [vmem:[#allocation11 + $0xf0] sm:$0xff]  ;;  %s2737_s23 = sshra.s32 %s1772_s16, 4  ;;  %s2738_s23 = int_to_ptr.hbm [resolvable:$true] %s2737_s23 }
 0x3a1   : > { %s2739_s22 = scalar_lea.hbm %s2738_s23, 8  ;;  %p2744_p12 = scmp.lt.s32.totalorder %s2738_s23, %s3190_s12 }
 0x3a2   : > { %p2740_p1 = scmp.ne.s32.totalorder %s2738_s23, %s2739_s22  ;;  %p2745_p8 = scmp.lt.s32.totalorder %s2743_s11, %s2739_s22 }
 0x3a4   : > { %v975_v38 = vpop.f32.mrf.mxu0  ;;  %p2741_p3 = pnand %p2740_p1, %p2974_p13  ;;  %p2746_p7 = por %p2745_p8, %p2744_p12 }
 0x3a5   : > { %v2152_v38 = vld [vmem:[#allocation10 + $0xb8] sm:$0xf0] }
 0x3a6   : > { %v2155_v39 = vor.u32 %v2378_v37, %v2152_v38  ;;  %v2115_v37 = vor.u32 %v2368_v34, %v2112_v36  ;;  %p2742_p5 = pneg %p2741_p3 }
 0x3a8   : > { %1412 = vmatpush.bf16.msra.mxu1 %v2155_v39  ;;  %v2391_v39 = vld [vmem:[#allocation11 + $0xb8] sm:$0xff]  ;;  %p2747_p9 = pnand %p2746_p7, %p2742_p5 }
 0x3f7   : > { %v987_v49 = vpop.permute.xlu2 %986 }
 0x404   : > { %v979_v45 = vpop.permute.xlu0 %978 }
 0x405   : > { %v989_v46 = vsel %vm774_vm0, %v916_v20, %v979_v45  ;;  %v2096_v20 = vld [vmem:[#allocation10 + $0xd0] sm:$0xf0]  ;;  %v2142_v45 = vld [vmem:[#allocation10 + $0x88] sm:$0xf] }
 0x406   : > { %v2099_v23 = vor.u32 %v2348_v18, %v2096_v20  ;;  %v2056_v18 = vld [vmem:[#allocation10 + $0x30] sm:$0xf0]  ;;  %v2371_v20 = vld [vmem:[#allocation10 + $0x34] sm:$0xf0] }
 0x407   : > { %v2059_v21 = vor.u32 %v2338_v16, %v2056_v18  ;;  %v2119_v22 = vor.u32 %v2371_v20, %v2118_v19  ;;  %v2362_v16 = vld [vmem:[#allocation11 + $0x50] sm:$0xff]  ;;  %v2392_v18 = vld [vmem:[#allocation11 + $0xc0] sm:$0xff]  ;;  %v2353_v19 = vld [vmem:[#allocation11 + $0x8] sm:$0xff] }
 0x408   : > { %1231 = vmatpush.bf16.msra.mxu3 %v2099_v23  ;;  %v2370_v23 = vld [vmem:[#allocation10 + $0x2c] sm:$0xf] }
 0x409   : > { %v2123_v26 = vor.u32 %v2370_v23, %v2120_v24  ;;  %v2361_v20 = vld [vmem:[#allocation11 + $0x48] sm:$0xff]  ;;  %v2360_v23 = vld [vmem:[#allocation11 + $0x40] sm:$0xff] }
 0x40c   : > { %v983_v48 = vpop.permute.xlu0 %982  ;;  %1232 = vmatpush.bf16.msra.mxu3 %v2091_v35  ;;  %v2111_v35 = vor.u32 %v2369_v33, %v2110_v32 }
 0x40d   : > { %v991_v51 = vsel %vm990_vm3, %v989_v46, %v983_v48  ;;  %v2377_v46 = vld [vmem:[#allocation10 + $0x94] sm:$0xf0]  ;;  %v2083_v48 = vor.u32 %v2344_v42, %v2080_v44  ;;  %v2390_v42 = vld [vmem:[#allocation11 + $0xb0] sm:$0xff] }
 0x40e   : > { %v993_v52 = vsel %vm992_vm4, %v991_v51, %v987_v49  ;;  %v2143_v49 = vor.u32 %v2377_v46, %v2142_v45  ;;  %v2376_v51 = vld [vmem:[#allocation10 + $0x8c] sm:$0xf] }
 0x40f   : > { %v994_v53 = vpack.c.bf16 %v993_v52, %v993_v52  ;;  %v2144_v52 = vld [vmem:[#allocation10 + $0x98] sm:$0xf0] }
 0x410   : > { %1233 = vmatpush.bf16.msra.mxu3 %v2083_v48  ;;  %1400 = vmatpush.bf16.msrb.mxu0 %v2143_v49 }
 0x411   : > { %1071 = vmatmul.bf16.vlgmr.msrb.gmra.mxu1 %v994_v53  ;;  %v2147_v53 = vor.u32 %v2376_v51, %v2144_v52 }
 0x413   : > { %1413 = vmatpush.bf16.msra.mxu1 %v2147_v53  ;;  %v2508_v53 = vld [vmem:[%s3162_s5] ss:$0 sm:$0xff] }
 0x414   : > { %1401 = vmatpush.bf16.msrb.mxu0 %v2135_v62  ;;  %v2389_v62 = vld [vmem:[#allocation11 + $0xa8] sm:$0xff] }
 0x417   : > { %1414 = vmatpush.bf16.msra.mxu1 %v2139_v0  ;;  %v2388_v0 = vld [vmem:[#allocation11 + $0xa0] sm:$0xff] }
 0x48e   : > { %v1072_v55 = vpop.f32.mrf.mxu1 }
 0x48f   : > { %v1073_v56 = vadd.f32 %v2507_v54, %v1072_v55  ;;  %v2070_v54 = vld [vmem:[#allocation10 + $0x60] sm:$0xf]  ;;  %v2343_v55 = vld [vmem:[#allocation10 + $0x6c] sm:$0xf0] }
 0x491   : > { %v1076_v57 = vadd.f32 %v1073_v56, %v3030_v47  ;;  %v1082_v47 = vmul.f32 128.0, %v2530_v7  ;;  %v2342_v56 = vld [vmem:[#allocation10 + $0x64] sm:$0xf] }
 0x493   : > { %1079 = vadd.xlane.f32.xlu1 %v1076_v57  ;;  %v1083_v8 = vsub.f32 1.0, %v1082_v47  ;;  %v2067_v47 = vor.u32 %v2340_v3, %v2064_v5  ;;  %v2365_v3 = vld [vmem:[#allocation11 + $0x68] sm:$0xff]  ;;  %v2395_v5 = vld [vmem:[#allocation11 + $0xd8] sm:$0xff] }
 0x495   : > { %v1084_v9 = vmul.f32 %v2530_v7, %v1083_v8 }
 0x496   : > { %v1074_v58 = vpop.f32.mrf.mxu1 }
 0x497   : > { %v1085_v10 = vadd.f32 %v2530_v7, %v1084_v9  ;;  %v2072_v58 = vld [vmem:[#allocation10 + $0x70] sm:$0xf0]  ;;  %v2372_v9 = vld [vmem:[#allocation10 + $0x4c] sm:$0xf] }
 0x498   : > { %v2075_v61 = vor.u32 %v2342_v56, %v2072_v58  ;;  %v2509_v56 = vld [vmem:[%s3163_s6] ss:$0 sm:$0xff] }
 0x499   : > { %v3085_v11 = vsel %vm1086_vm5, %v2530_v7, %v1085_v10  ;;  %v2373_v7 = vld [vmem:[#allocation10 + $0x54] sm:$0xf0]  ;;  %v2128_v10 = vld [vmem:[#allocation10 + $0x58] sm:$0xf0] }
 0x49a   : > { %1234 = vmatpush.bf16.msra.mxu3 %v2075_v61  ;;  %v2127_v8 = vor.u32 %v2373_v7, %v2126_v6  ;;  %v2367_v61 = vld [vmem:[#allocation11 + $0x78] sm:$0xff]  ;;  %v2356_v6 = vld [vmem:[#allocation11 + $0x20] sm:$0xff] }
 0x49b   : > { %v2364_v7 = vld [vmem:[#allocation11 + $0x60] sm:$0xff] }
 0x49c   : > { %1402 = vmatpush.bf16.msrb.mxu0 %v2127_v8  ;;  %v2394_v8 = vld [vmem:[#allocation11 + $0xd0] sm:$0xff] }
 0x49e   : > { %1235 = vmatpush.bf16.msra.mxu3 %v2067_v47  ;;  %v2386_v47 = vld [vmem:[#allocation11 + $0x90] sm:$0xff] }
 0x4a0   : > { %1403 = vmatpush.bf16.msrb.mxu0 %v2119_v22  ;;  %v2352_v22 = vld [vmem:[#allocation11] sm:$0xff] }
 0x4a2   : > { %1236 = vmatpush.bf16.msra.mxu3 %v2059_v21  ;;  %v1311_v21 = vld [vmem:[%s3165_s8 + $0x2] sm:$0x3] }
 0x4a3   : > { %v1313_v24 = vperm.slane %v1311_v21, 0  ;;  %v1314_v25 = vperm.slane %v1311_v21, 1 }
 0x4a4   : > { %1404 = vmatpush.bf16.msrb.mxu0 %v2111_v35 }
 0x4a6   : > { %1237 = vmatpush.bf16.msra.mxu3 %v2051_v31 }
 0x4a8   : > { %1693 = vmatpush.bf16.msra.mxu0 %v2359_v60 }
 0x4aa   : > { %1584 = vmatpush.bf16.msrb.mxu3 %v2399_v40 }
 0x4ac   : > { %1694 = vmatpush.bf16.msra.mxu0 %v2358_v63 }
 0x4ae   : > { %1585 = vmatpush.bf16.msrb.mxu3 %v2398_v43 }
 0x4b0   : > { %1695 = vmatpush.bf16.msra.mxu0 %v2357_v2 }
 0x4b4   : > { %1696 = vmatpush.bf16.msra.mxu0 %v2356_v6 }
 0x506   : > { %v1080_v12 = vpop.xlane.xlu1 %1079 }
 0x507   : > { %v1088_v13 = vmul.f32 %v3085_v11, %v1080_v12  ;;  %v2131_v12 = vor.u32 %v2372_v9, %v2128_v10  ;;  %v2355_v9 = vld [vmem:[#allocation11 + $0x18] sm:$0xff] }
 0x508   : > { %v2363_v10 = vld [vmem:[#allocation11 + $0x58] sm:$0xff]  ;;  %1697 = vmatpush.bf16.msra.mxu0 %v2355_v9 }
 0x509   : > { %v3088_v14 = vsub.f32 %v1076_v57, %v1088_v13  ;;  %v2071_v57 = vor.u32 %v2343_v55, %v2070_v54  ;;  %v2054_v13 = vld [vmem:[#allocation10 + $0x20] sm:$0xf]  ;;  %1415 = vmatpush.bf16.msra.mxu1 %v2131_v12  ;;  %v2385_v12 = vld [vmem:[#allocation11 + $0x88] sm:$0xff] }
 0x50b   : > { %v1090_v15 = vmul.f32 %v3088_v14, %v3088_v14  ;;  %1221 = vmatpush.bf16.msrb.mxu2 %v2071_v57 }
 0x50d   : > { %1091 = vadd.xlane.f32.xlu0 %v1090_v15  ;;  %v2339_v15 = vld [vmem:[#allocation10 + $0x2c] sm:$0xf0]  ;;  %1416 = vmatpush.bf16.msra.mxu1 %v2123_v26  ;;  %v1131_v26 = vld [vmem:[%s3165_s8] sm:$0x3] }
 0x50e   : > { %v2055_v17 = vor.u32 %v2339_v15, %v2054_v13  ;;  %v2393_v13 = vld [vmem:[#allocation11 + $0xc8] sm:$0xff]  ;;  %v2354_v15 = vld [vmem:[#allocation11 + $0x10] sm:$0xff]  ;;  %v1133_v31 = vperm.slane %v1131_v26, 0  ;;  %v1134_v32 = vperm.slane %v1131_v26, 1 }
 0x50f   : > { %1222 = vmatpush.bf16.msrb.mxu2 %v2063_v4  ;;  %v2387_v4 = vld [vmem:[#allocation11 + $0x98] sm:$0xff]  ;;  %1698 = vmatpush.bf16.msra.mxu0 %v2354_v15 }
 0x511   : > { %1417 = vmatpush.bf16.msra.mxu1 %v2115_v37 }
 0x513   : > { %1223 = vmatpush.bf16.msrb.mxu2 %v2055_v17  ;;  %v2384_v17 = vld [vmem:[#allocation11 + $0x80] sm:$0xff]  ;;  %1699 = vmatpush.bf16.msra.mxu0 %v2353_v19 }
 0x515   : > { %1706 = vmatpush.bf16.msrb.mxu1 %v2367_v61 }
 0x517   : > { %1224 = vmatpush.bf16.msrb.mxu2 %v2047_v30  ;;  %1700 = vmatpush.bf16.msra.mxu0 %v2352_v22 }
 0x519   : > { %1707 = vmatpush.bf16.msrb.mxu1 %v2366_v50 }
 0x51b   : > { %1571 = vmatpush.bf16.msra.mxu2 %v2391_v39 }
 0x51d   : > { %1708 = vmatpush.bf16.msrb.mxu1 %v2365_v3 }
 0x51f   : > { %1572 = vmatpush.bf16.msra.mxu2 %v2390_v42 }
 0x521   : > { %1709 = vmatpush.bf16.msrb.mxu1 %v2364_v7 }
 0x523   : > { %1573 = vmatpush.bf16.msra.mxu2 %v2389_v62 }
 0x525   : > { %1710 = vmatpush.bf16.msrb.mxu1 %v2363_v10 }
 0x527   : > { %1574 = vmatpush.bf16.msra.mxu2 %v2388_v0 }
 0x529   : > { %1711 = vmatpush.bf16.msrb.mxu1 %v2362_v16 }
 0x52b   : > { %1575 = vmatpush.bf16.msra.mxu2 %v2387_v4 }
 0x52d   : > { %1712 = vmatpush.bf16.msrb.mxu1 %v2361_v20 }
 0x52f   : > { %1576 = vmatpush.bf16.msra.mxu2 %v2386_v47 }
 0x531   : > { %1713 = vmatpush.bf16.msrb.mxu1 %v2360_v23 }
 0x533   : > { %1577 = vmatpush.bf16.msra.mxu2 %v2385_v12 }
 0x537   : > { %1578 = vmatpush.bf16.msra.mxu2 %v2384_v17 }
 0x580   : > { %v1092_v38 = vpop.xlane.xlu0 %1091 }
 0x581   : > { %v1093_v41 = vmul.f32 %v1092_v38, %v3085_v11 }
 0x583   : > { %v1094_v44 = vadd.f32 1e-12, %v1093_v41 }
 0x585   : > { %2531 = vrsqrt.f32 %v1094_v44  ;;  %vm1101_vm7 = vweird.f32 %v1094_v44 }
 0x58b   : > { %v2532_v45 = vpop.eup %2531 }
 0x58c   : > { %v1096_v46 = vmul.f32 %v2532_v45, %v1094_v44  ;;  %vm1102_vm6 = vweird.f32 %v2532_v45 }
 0x58d   : > { %vm1103_vm8 = vmor %vm1101_vm7, %vm1102_vm6 }
 0x58e   : > { %v1097_v48 = vmul.f32 %v2532_v45, %v1096_v46 }
 0x590   : > { %v1098_v49 = vmul.f32 0.5, %v1097_v48 }
 0x592   : > { %v1099_v51 = vsub.f32 1.5, %v1098_v49 }
 0x594   : > { %v1100_v52 = vmul.f32 %v2532_v45, %v1099_v51 }
 0x596   : > { %v1104_v54 = vsel %vm1103_vm8, %v2532_v45, %v1100_v52 }
 0x597   : > { %v1105_v55 = vmul.f32 %v1104_v54, %v3088_v14  ;;  %v2397_v14 = vld [vmem:[#allocation11 + $0xe8] sm:$0xff] }
 0x598   : > { %1586 = vmatpush.bf16.msrb.mxu3 %v2397_v14 }
 0x599   : > { %v1109_v57 = vmul.f32 %v2508_v53, %v1105_v55 }
 0x59b   : > { %v3100_v58 = vadd.f32 %v2509_v56, %v1109_v57 }
 0x59c   : > { %1587 = vmatpush.bf16.msrb.mxu3 %v2396_v1 }
 0x59d   : > { %v1114_v59 = vpack.c.bf16 %v3100_v58, %v3100_v58 }
 0x59f   : > { %1225 = vmatmul.bf16.vlgmr.msrb.gmra.mxu2 %v1114_v59  ;;  %1238 = vmatmul.bf16.vlgmr.msra.gmra.mxu3 %v1114_v59 }
 0x5a0   : > { %1405 = vmatmul.bf16.vlgmr.msrb.gmra.mxu0 %v1114_v59  ;;  %1418 = vmatmul.bf16.vlgmr.msra.gmra.mxu1 %v1114_v59 }
 0x5a1   : > { %1588 = vmatpush.bf16.msrb.mxu3 %v2395_v5 }
 0x5a5   : > { %1589 = vmatpush.bf16.msrb.mxu3 %v2394_v8 }
 0x5a9   : > { %1590 = vmatpush.bf16.msrb.mxu3 %v2393_v13 }
 0x5ad   : > { %1591 = vmatpush.bf16.msrb.mxu3 %v2392_v18 }
 0x61d   : > { %v1406_v27 = vpop.f32.mrf.mxu0  ;;  %v1419_v28 = vpop.f32.mrf.mxu1 }
 0x61e   : > { %v1407_v29 = vadd.f32 %v1406_v27, %v1313_v24  ;;  %v1420_v30 = vadd.f32 %v1419_v28, %v1314_v25  ;;  %v2510_v25 = vld [vmem:[%s3167_s10] ss:$0 sm:$0xff] }
 0x620   : > { %v1425_v33 = vmul.f32 0.044715, %v1407_v29  ;;  %v1426_v34 = vmul.f32 0.044715, %v1420_v30  ;;  %v1423_v0 = vmul.f32 0.5, %v1407_v29  ;;  %v1424_v2 = vmul.f32 0.5, %v1420_v30 }
 0x622   : > { %v1427_v35 = vmul.f32 %v1425_v33, %v1407_v29  ;;  %v1428_v36 = vmul.f32 %v1426_v34, %v1420_v30  ;;  %v1226_v37 = vpop.f32.mrf.mxu2  ;;  %v1239_v38 = vpop.f32.mrf.mxu3 }
 0x623   : > { %v1227_v39 = vadd.f32 %v1226_v37, %v1133_v31  ;;  %v1240_v40 = vadd.f32 %v1239_v38, %v1134_v32 }
 0x624   : > { %v1429_v41 = vmul.f32 %v1427_v35, %v1407_v29  ;;  %v1430_v42 = vmul.f32 %v1428_v36, %v1420_v30 }
 0x625   : > { %v1245_v43 = vmul.f32 0.044715, %v1227_v39  ;;  %v1246_v44 = vmul.f32 0.044715, %v1240_v40  ;;  %v1408_v45 = vpop.f32.mrf.mxu0  ;;  %v1421_v46 = vpop.f32.mrf.mxu1  ;;  %v1243_v9 = vmul.f32 0.5, %v1227_v39  ;;  %v1244_v12 = vmul.f32 0.5, %v1240_v40 }
 0x626   : > { %v1431_v48 = vadd.f32 %v1429_v41, %v1407_v29  ;;  %v1432_v49 = vadd.f32 %v1430_v42, %v1420_v30  ;;  %v2511_v45 = vld [vmem:[%s3189_s30] ss:$0 sm:$0xff] }
 0x627   : > { %v1247_v51 = vmul.f32 %v1245_v43, %v1227_v39  ;;  %v1248_v52 = vmul.f32 %v1246_v44, %v1240_v40 }
 0x628   : > { %v1433_v53 = vmul.f32 0.7978846, %v1431_v48  ;;  %v1434_v54 = vmul.f32 0.7978846, %v1432_v49  ;;  %v2512_v48 = vld [vmem:[%s3191_s2] ss:$0 sm:$0xff] }
 0x629   : > { %v1249_v55 = vmul.f32 %v1247_v51, %v1227_v39  ;;  %v1250_v56 = vmul.f32 %v1248_v52, %v1240_v40 }
 0x62a   : > { %v1228_v57 = vpop.f32.mrf.mxu2  ;;  %v1241_v59 = vpop.f32.mrf.mxu3  ;;  %2533 = vtanh.f32 %v1433_v53 }
 0x62b   : > { %2535 = vtanh.f32 %v1434_v54  ;;  %v1251_v60 = vadd.f32 %v1249_v55, %v1227_v39  ;;  %v1252_v61 = vadd.f32 %v1250_v56, %v1240_v40 }
 0x62d   : > { %v1253_v62 = vmul.f32 0.7978846, %v1251_v60  ;;  %v1254_v14 = vmul.f32 0.7978846, %v1252_v61 }
 0x62f   : > { %2537 = vtanh.f32 %v1253_v62 }
 0x630   : > { %v2534_v63 = vpop.eup %2533  ;;  %2539 = vtanh.f32 %v1254_v14 }
 0x631   : > { %v2536_v50 = vpop.eup %2535  ;;  %v1437_v1 = vadd.f32 1.0, %v2534_v63 }
 0x632   : > { %v1438_v3 = vadd.f32 1.0, %v2536_v50 }
 0x633   : > { %v1439_v4 = vmul.f32 %v1437_v1, %v1423_v0 }
 0x634   : > { %v1440_v5 = vmul.f32 %v1438_v3, %v1424_v2 }
 0x635   : > { %v2538_v6 = vpop.eup %2537  ;;  %v1441_v7 = vpack.c.bf16 %v1439_v4, %v1439_v4 }
 0x636   : > { %v2540_v47 = vpop.eup %2539  ;;  %v1442_v8 = vpack.c.bf16 %v1440_v5, %v1440_v5  ;;  %v1257_v10 = vadd.f32 1.0, %v2538_v6 }
 0x637   : > { %1579 = vmatmul.bf16.vlgmr.msra.gmra.mxu2 %v1441_v7  ;;  %v1258_v13 = vadd.f32 1.0, %v2540_v47 }
 0x638   : > { %1592 = vmatmul.bf16.vlgmr.msrb.gmra.mxu3 %v1442_v8  ;;  %v1259_v15 = vmul.f32 %v1257_v10, %v1243_v9 }
 0x639   : > { %v1260_v16 = vmul.f32 %v1258_v13, %v1244_v12 }
 0x63a   : > { %v1261_v17 = vpack.c.bf16 %v1259_v15, %v1259_v15 }
 0x63b   : > { %v1262_v18 = vpack.c.bf16 %v1260_v16, %v1260_v16 }
 0x63c   : > { %1701 = vmatmul.bf16.vlgmr.msra.gmra.mxu0 %v1261_v17 }
 0x63d   : > { %1714 = vmatmul.bf16.vlgmr.msrb.gmra.mxu1 %v1262_v18 }
 0x6b9   : > { %v1702_v19 = vpop.f32.mrf.mxu0 }
 0x6ba   : > { %v1580_v20 = vpop.f32.mrf.mxu2  ;;  %v1715_v21 = vpop.f32.mrf.mxu1 }
 0x6bb   : > { %v1593_v22 = vpop.f32.mrf.mxu3 }
 0x6bc   : > { %v1594_v23 = vadd.f32 %v1593_v22, %v1580_v20 }
 0x6be   : > { %v1703_v24 = vadd.f32 %v1702_v19, %v1594_v23 }
 0x6c0   : > { %v1716_v26 = vadd.f32 %v1715_v21, %v1703_v24 }
 0x6c1   : > { %v1704_v27 = vpop.f32.mrf.mxu0 }
 0x6c2   : > { %v1723_v28 = vadd.f32 %v2510_v25, %v1716_v26  ;;  %v1582_v29 = vpop.f32.mrf.mxu2  ;;  %v1717_v30 = vpop.f32.mrf.mxu1 }
 0x6c3   : > { %v1595_v31 = vpop.f32.mrf.mxu3 }
 0x6c4   : > { %v1724_v32 = vadd.f32 %v1723_v28, %v3100_v58 }
 0x6c6   : > { %1727 = vadd.xlane.f32.xlu2 %v1724_v32 }
 0x739   : > { %v1728_v33 = vpop.xlane.xlu2 %1727 }
 0x73a   : > { %v1729_v34 = vmul.f32 %v1728_v33, %v3085_v11 }
 0x73c   : > { %v1730_v35 = vsub.f32 %v1724_v32, %v1729_v34 }
 0x73e   : > { %v1731_v36 = vmul.f32 %v1730_v35, %v1730_v35 }
 0x740   : > { %1732 = vadd.xlane.f32.xlu1 %v1731_v36 }
 0x7b3   : > { %v1733_v37 = vpop.xlane.xlu1 %1732 }
 0x7b4   : > { %v1734_v38 = vmul.f32 %v1733_v37, %v3085_v11 }
 0x7b6   : > { %v1735_v39 = vadd.f32 1e-12, %v1734_v38 }
 0x7b8   : > { %2541 = vrsqrt.f32 %v1735_v39  ;;  %vm1742_vm10 = vweird.f32 %v1735_v39 }
 0x7be   : > { %v2542_v40 = vpop.eup %2541 }
 0x7bf   : > { %v1737_v41 = vmul.f32 %v2542_v40, %v1735_v39  ;;  %vm1743_vm9 = vweird.f32 %v2542_v40 }
 0x7c0   : > { %vm1744_vm11 = vmor %vm1742_vm10, %vm1743_vm9 }
 0x7c1   : > { %v1738_v42 = vmul.f32 %v2542_v40, %v1737_v41 }
 0x7c3   : > { %v1739_v43 = vmul.f32 0.5, %v1738_v42 }
 0x7c5   : > { %v1740_v44 = vsub.f32 1.5, %v1739_v43 }
 0x7c7   : > { %v1741_v58 = vmul.f32 %v2542_v40, %v1740_v44 }
 0x7c9   : > { %v1745_v11 = vsel %vm1744_vm11, %v2542_v40, %v1741_v58 }
 0x7ca   : > { %v1746_v46 = vmul.f32 %v1745_v11, %v1730_v35 }
 0x7cc   : > { %v1750_v49 = vmul.f32 %v2511_v45, %v1746_v46 }
 0x7ce   : > { %v1754_v51 = vadd.f32 %v2512_v48, %v1750_v49 }
 0x7d0   : > { %1755 = vst [vmem:[%s538_s15] sm:$0xff] %v1754_v51 }
 0x7d1   : > { %2750 = shalt.err (!%p2747_p9)
}
 0x7d2   : > { %2422 = dma.vmem_to_hbm [thread:$0]  (%p2974_p13), %s1770_s7, 128, %s1772_s16, %s1757_s13  }
 0x7d3 PF: > { %s1783_s19 = sand.u32 1, %s2789_s25   ;;  %p3192_p10 = scmp.ge.s32.totalorder %s2801_s28, 2 }
 0x7d4   : > { %s1784_s24 = scalar_lea.sflag [#allocation4], %s1783_s19 }
 0x7d5   : > { %p2445_p11 = pnand %p3192_p10, %p2979_p4 }
 0x7d7   : > { %p2446_p0 = pneg %p2445_p11 }
 0x7d9   : > { %2784 = dma.done.wait (%p2446_p0), %s1784_s24, 128  }
 0x7da   : > { %2786 = vsyncadd (%p2446_p0), %s1784_s24, 4294967168  ;;  %p29_p2 = scmp.ge.s32.totalorder %s2954_s20, 4   ;;  %s3193_s25 = smov %s2793_s26 }
 0x7db   : > { %s3194_s26 = smov %s2797_s27  ;;  %s3195_s27 = smov %s2966_s18 }
 0x7dc   : > { %s3196_s28 = smov %s2954_s20  ;;  %31 = sbr.rel (!%p29_p2) target bundleno = 16 (0x10), region = 137 }
 0x7e1   :  { %1790 = vsyncpa [#allocation3], 1 }
 0x7e2   :  { %1792 = vsyncpa [#allocation3 + $0x1], 1 }
 0x7e3   :  { %1793 = vsyncpa [#allocation6], 1 }
 0x7e4   :  { %1794 = vsyncpa [#allocation9], 1 }
 0x7e5   :  { %1795 = vsyncpa [#allocation12], 1 }
 0x7e6   :  { %1796 = vsyncpa [#allocation4], 1 }
 0x7e7   :  { %1798 = vsyncpa [#allocation4 + $0x1], 1 }

</bundles_post_ra>
